<compile_context>
chip_gen: v7x
topology: tpu7x:2x2x1
jax: 0.10.0
libtpu: 0.0.40
codegen_flags: <defaults>
</compile_context>

<pallas_src>
import jax
import jax.numpy as jnp
from jax.experimental import pallas as pl
from jax.experimental.pallas import tpu as pltpu


def _round_up(v, m):
    return (v + m - 1) // m * m


# --------------------------------------------------------------------------
# Kernels
# --------------------------------------------------------------------------
def _sage_layer_kernel(adj_ref, h_src_ref, h_dst_ref, wl_ref, wr_ref, b_ref,
                       out_ref, agg_ref):
    """One SAGEConv(aggr='sum') + ReLU layer (bf16 activations out).

    grid = (dst-node tiles [parallel], src-node tiles [arbitrary/reduction]).
    agg_ref (f32) accumulates sum_{j in N(i)} h_j over src tiles; on the last src
    tile the projection  agg @ W_l + h_i @ W_r + b  and the ReLU run once.
    """
    k = pl.program_id(1)

    @pl.when(k == 0)
    def _():
        agg_ref[...] = jnp.zeros_like(agg_ref)

    # Neighbor sum: bf16 x bf16 MXU matmul, f32 accumulation.
    agg_ref[...] += jnp.dot(adj_ref[...], h_src_ref[...],
                            preferred_element_type=jnp.float32)

    @pl.when(k == pl.num_programs(1) - 1)
    def _():
        y = (jnp.dot(agg_ref[...].astype(jnp.bfloat16), wl_ref[...],
                     preferred_element_type=jnp.float32)
             + jnp.dot(h_dst_ref[...], wr_ref[...],
                       preferred_element_type=jnp.float32)
             + b_ref[...])
        out_ref[...] = jnp.maximum(y, 0.0).astype(out_ref.dtype)  # ReLU


def _sage_pool_kernel(adj_ref, h_src_ref, h_dst_ref, wl_ref, wr_ref, b_ref,
                      pool_ref, gep_ref, agg_ref):
    """Last SAGEConv layer with global_mean_pool fused into the epilogue.

    grid = (dst tiles, src tiles), both "arbitrary" (the pooled output is an
    accumulator across dst tiles).  h3 never touches HBM.
    """
    i = pl.program_id(0)
    k = pl.program_id(1)

    @pl.when((i == 0) & (k == 0))
    def _():
        gep_ref[...] = jnp.zeros_like(gep_ref)

    @pl.when(k == 0)
    def _():
        agg_ref[...] = jnp.zeros_like(agg_ref)

    agg_ref[...] += jnp.dot(adj_ref[...], h_src_ref[...],
                            preferred_element_type=jnp.float32)

    @pl.when(k == pl.num_programs(1) - 1)
    def _():
        y = (jnp.dot(agg_ref[...].astype(jnp.bfloat16), wl_ref[...],
                     preferred_element_type=jnp.float32)
             + jnp.dot(h_dst_ref[...], wr_ref[...],
                       preferred_element_type=jnp.float32)
             + b_ref[...])
        y = jnp.maximum(y, 0.0)
        # Mean pool: pool rows already carry 1/count weights; padded nodes weigh 0.
        gep_ref[...] += jnp.dot(pool_ref[...], y,
                                preferred_element_type=jnp.float32)


# --------------------------------------------------------------------------
# pallas_call wrappers
# --------------------------------------------------------------------------
_VMEM_LIMIT = 32 * 1024 * 1024  # conservative; safe on v7x (64 MiB physical / TC)


def _sage_layer(h, adj, wl, wr, b, *, tm, tk):
    n_pad, f_in = h.shape
    f_out = wl.shape[1]
    grid = (n_pad // tm, n_pad // tk)
    return pl.pallas_call(
        _sage_layer_kernel,
        out_shape=jax.ShapeDtypeStruct((n_pad, f_out), jnp.bfloat16),
        grid_spec=pltpu.PrefetchScalarGridSpec(
            num_scalar_prefetch=0,
            grid=grid,
            in_specs=[
                pl.BlockSpec((tm, tk), lambda i, k: (i, k)),        # adj tile (dst, src)
                pl.BlockSpec((tk, f_in), lambda i, k: (k, 0)),      # h rows for src tile
                pl.BlockSpec((tm, f_in), lambda i, k: (i, 0)),      # h rows for dst tile (self term)
                pl.BlockSpec((f_in, f_out), lambda i, k: (0, 0)),   # W_l
                pl.BlockSpec((f_in, f_out), lambda i, k: (0, 0)),   # W_r
                pl.BlockSpec((1, f_out), lambda i, k: (0, 0)),      # bias
            ],
            out_specs=pl.BlockSpec((tm, f_out), lambda i, k: (i, 0)),
            scratch_shapes=[pltpu.VMEM((tm, f_in), jnp.float32)],
        ),
        compiler_params=pltpu.CompilerParams(
            dimension_semantics=("parallel", "arbitrary"),
            vmem_limit_bytes=_VMEM_LIMIT,
        ),
    )(adj, h, h, wl, wr, b)


def _sage_pool_layer(h, adj, pool, wl, wr, b, *, tm, tk):
    n_pad, f_in = h.shape
    f_out = wl.shape[1]
    bsz = pool.shape[0]
    grid = (n_pad // tm, n_pad // tk)
    return pl.pallas_call(
        _sage_pool_kernel,
        out_shape=jax.ShapeDtypeStruct((bsz, f_out), jnp.float32),
        grid_spec=pltpu.PrefetchScalarGridSpec(
            num_scalar_prefetch=0,
            grid=grid,
            in_specs=[
                pl.BlockSpec((tm, tk), lambda i, k: (i, k)),        # adj tile
                pl.BlockSpec((tk, f_in), lambda i, k: (k, 0)),      # h src rows
                pl.BlockSpec((tm, f_in), lambda i, k: (i, 0)),      # h dst rows
                pl.BlockSpec((f_in, f_out), lambda i, k: (0, 0)),   # W_l
                pl.BlockSpec((f_in, f_out), lambda i, k: (0, 0)),   # W_r
                pl.BlockSpec((1, f_out), lambda i, k: (0, 0)),      # bias
                pl.BlockSpec((bsz, tm), lambda i, k: (0, i)),       # pool slab for dst tile
            ],
            out_specs=pl.BlockSpec((bsz, f_out), lambda i, k: (0, 0)),
            scratch_shapes=[pltpu.VMEM((tm, f_in), jnp.float32)],
        ),
        compiler_params=pltpu.CompilerParams(
            dimension_semantics=("arbitrary", "arbitrary"),
            vmem_limit_bytes=_VMEM_LIMIT,
        ),
    )(adj, h, h, wl, wr, b, pool)


# --------------------------------------------------------------------------
# Operand preparation (hoistable: depends only on graph topology / weights)
# --------------------------------------------------------------------------
def build_graph_operands(x, edge_index, batch, num_graphs, *, node_tile=512):
    """Pad node/feature dims, build the bf16 adjacency and the f32 mean-pool matrix.

    Hoist this out of the per-call path when the graph topology is reused.
    Returns (x_pad_bf16, adj_bf16, pool_f32, tile, f_pad).
    """
    n, f_in = x.shape
    tile = max(128, min(_round_up(node_tile, 128), _round_up(n, 128)))
    n_pad = _round_up(n, tile)
    f_pad = _round_up(max(f_in, 1), 128)  # 54 -> 128: lane-dense, MXU-deep contraction

    # A[dst, src] += 1  (PyG source_to_target flow); padded nodes have no edges.
    src, dst = edge_index[0], edge_index[1]
    adj = jnp.zeros((n_pad, n_pad), jnp.float32).at[dst, src].add(1.0)
    # bf16 represents integers exactly up to 256 -> adjacency counts stay exact.
    assert float(jnp.max(adj)) <= 256.0, "edge multiplicity too large for bf16 adjacency"
    adj = adj.astype(jnp.bfloat16)

    # Mean-pool matrix [B, n_pad]; rows carry 1/count weights, zero on padded nodes.
    graph_ids = jnp.arange(num_graphs, dtype=batch.dtype)
    one_hot = (batch[None, :] == graph_ids[:, None]).astype(jnp.float32)  # [B, n]
    counts = jnp.maximum(one_hot.sum(axis=1, keepdims=True), 1.0)
    pool = jnp.zeros((num_graphs, n_pad), jnp.float32).at[:, :n].set(one_hot / counts)

    x_pad = jnp.zeros((n_pad, f_pad), jnp.float32).at[:n, :f_in].set(x)
    return x_pad.astype(jnp.bfloat16), adj, pool, tile, f_pad


def prepare_params(params, f_pad):
    """Pad layer-1 weights to f_pad input rows and cast all weights to bf16."""
    def pad_rows(w):
        if w.shape[0] == f_pad:
            return w
        return jnp.zeros((f_pad, w.shape[1]), w.dtype).at[:w.shape[0]].set(w)

    bf = jnp.bfloat16
    return {
        "w1l": pad_rows(params["w1l"]).astype(bf),
        "w1r": pad_rows(params["w1r"]).astype(bf),
        "b1": params["b1l"],
        "w2l": params["w2l"].astype(bf), "w2r": params["w2r"].astype(bf), "b2": params["b2l"],
        "w3l": params["w3l"].astype(bf), "w3r": params["w3r"].astype(bf), "b3": params["b3l"],
    }


def graph_protein_forward(x_pad, adj, pool, p, *, tm, tk):
    h = _sage_layer(x_pad, adj, p["w1l"], p["w1r"], p["b1"], tm=tm, tk=tk)
    h = _sage_layer(h, adj, p["w2l"], p["w2r"], p["b2"], tm=tm, tk=tk)
    # Layer 3 + global_mean_pool fused: h3 never round-trips HBM.
    return _sage_pool_layer(h, adj, pool, p["w3l"], p["w3r"], p["b3"], tm=tm, tk=tk)


# --------------------------------------------------------------------------
# Pure-JAX references + synthetic params
# --------------------------------------------------------------------------
def _reference_f32(x, edge_index, batch, params, num_graphs):
    n = x.shape[0]
    src, dst = edge_index[0], edge_index[1]
    adj = jnp.zeros((n, n), jnp.float32).at[dst, src].add(1.0)

    def sage_relu(h, wl, bl, wr):
        return jax.nn.relu((adj @ h) @ wl + bl + h @ wr)

    h = sage_relu(x, params["w1l"], params["b1l"], params["w1r"])
    h = sage_relu(h, params["w2l"], params["b2l"], params["w2r"])
    h = sage_relu(h, params["w3l"], params["b3l"], params["w3r"])
    one_hot = (batch[None, :] == jnp.arange(num_graphs)[:, None]).astype(jnp.float32)
    counts = jnp.maximum(one_hot.sum(axis=1, keepdims=True), 1.0)
    return (one_hot / counts) @ h


def _reference_bf16(x, edge_index, batch, params, num_graphs):
    """Reference that mirrors the kernel's dtype flow (bf16 feeds, f32 accumulation)."""
    bf = jnp.bfloat16
    n = x.shape[0]
    src, dst = edge_index[0], edge_index[1]
    adj = jnp.zeros((n, n), jnp.float32).at[dst, src].add(1.0).astype(bf)

    def sage(h_bf, wl, bl, wr, last=False):
        agg = jnp.dot(adj, h_bf, preferred_element_type=jnp.float32)
        y = (jnp.dot(agg.astype(bf), wl.astype(bf), preferred_element_type=jnp.float32)
             + jnp.dot(h_bf, wr.astype(bf), preferred_element_type=jnp.float32)
             + bl)
        y = jnp.maximum(y, 0.0)
        return y if last else y.astype(bf)

    h = sage(x.astype(bf), params["w1l"], params["b1l"], params["w1r"])
    h = sage(h, params["w2l"], params["b2l"], params["w2r"])
    h = sage(h, params["w3l"], params["b3l"], params["w3r"], last=True)
    one_hot = (batch[None, :] == jnp.arange(num_graphs)[:, None]).astype(jnp.float32)
    counts = jnp.maximum(one_hot.sum(axis=1, keepdims=True), 1.0)
    return (one_hot / counts) @ h


def make_params(key, num_features_pro=54, output_dim=128):
    """Deterministic synthetic SAGEConv parameters (shapes from Graph_protein.__init__)."""
    dims = [(num_features_pro, output_dim),
            (output_dim, output_dim * 2),
            (output_dim * 2, output_dim * 2)]
    params = {}
    keys = jax.random.split(key, 9)
    k = 0
    for layer, (fi, fo) in enumerate(dims, start=1):
        scale = 1.0 / jnp.sqrt(jnp.float32(fi))
        params[f"w{layer}l"] = jax.random.normal(keys[k], (fi, fo), jnp.float32) * scale; k += 1
        params[f"b{layer}l"] = jax.random.normal(keys[k], (1, fo), jnp.float32) * 0.01; k += 1
        params[f"w{layer}r"] = jax.random.normal(keys[k], (fi, fo), jnp.float32) * scale; k += 1
    # NOTE: proFC1 / proFC2 / dropout are defined in __init__ but never used in forward.
    return params


if __name__ == "__main__":
    key = jax.random.PRNGKey(0)
    k_x, k_src, k_dst, k_p = jax.random.split(key, 4)

    N, E, B = 300, 900, 2        # nodes, edges, graphs in the batch
    F_IN, D = 54, 128            # num_features_pro, output_dim (module defaults)
    NODE_TILE = 256              # -> n_pad=512, 2x2 grid; even dst-tile count for v7x.
                                 # Use 512-1024 for realistic graph sizes.

    x = jax.random.normal(k_x, (N, F_IN), jnp.float32)
    src = jax.random.randint(k_src, (E,), 0, N, dtype=jnp.int32)
    dst = jax.random.randint(k_dst, (E,), 0, N, dtype=jnp.int32)
    edge_index = jnp.stack([src, dst])                       # [2, E]
    batch = jnp.concatenate([jnp.zeros(N // 2, jnp.int32),   # [N]
                             jnp.ones(N - N // 2, jnp.int32)])

    params = make_params(k_p, num_features_pro=F_IN, output_dim=D)

    # Topology-dependent operands built once (hoistable across forward calls).
    x_pad, adj, pool, tile, f_pad = build_graph_operands(
        x, edge_index, batch, B, node_tile=NODE_TILE)
    prepped = prepare_params(params, f_pad)

    out = graph_protein_forward(x_pad, adj, pool, prepped, tm=tile, tk=tile)
    out = jax.block_until_ready(out)

    assert out.shape == (B, 2 * D), out.shape

    # Tight check against a reference with the same bf16 dtype flow.
    ref_bf = _reference_bf16(x, edge_index, batch, params, num_graphs=B)
    err_bf = float(jnp.max(jnp.abs(out - ref_bf)))
    assert jnp.allclose(out, ref_bf, atol=1e-2, rtol=1e-2), err_bf

    # Looser sanity check against the full-f32 reference (bf16 activations round).
    ref_f32 = _reference_f32(x, edge_index, batch, params, num_graphs=B)
    err_f32 = float(jnp.max(jnp.abs(out - ref_f32)))
    assert jnp.allclose(out, ref_f32, atol=5e-2, rtol=5e-2), err_f32

    print("KERNEL_OK")
</pallas_src>

<mosaic_0001>
module attributes {stable_mosaic.version = 11 : i64} {
  func.func @_sage_layer_kernel(%arg0: i32, %arg1: i32, %arg2: memref<256x256xbf16, #tpu.memory_space<vmem>>, %arg3: memref<256x128xbf16, #tpu.memory_space<vmem>>, %arg4: memref<256x128xbf16, #tpu.memory_space<vmem>>, %arg5: memref<128x128xbf16, #tpu.memory_space<vmem>>, %arg6: memref<128x128xbf16, #tpu.memory_space<vmem>>, %arg7: memref<1x128xf32, #tpu.memory_space<vmem>>, %arg8: memref<256x128xbf16, #tpu.memory_space<vmem>>, %arg9: memref<256x128xf32, #tpu.memory_space<vmem>>) attributes {dimension_semantics = [#tpu.dimension_semantics<parallel>, #tpu.dimension_semantics<arbitrary>], iteration_bounds = array<i64: 2, 2>, scalar_prefetch = 0 : i64, scratch_operands = 1 : i64, tpu.core_type = #tpu.core_type<tc>, window_params = [{transform_indices = @transform_0, window_bounds = array<i64: 256, 256>}, {transform_indices = @transform_1, window_bounds = array<i64: 256, 128>}, {transform_indices = @transform_2, window_bounds = array<i64: 256, 128>}, {pipeline_mode = #tpu.pipeline_mode<synchronous>, transform_indices = @transform_3, window_bounds = array<i64: 128, 128>}, {pipeline_mode = #tpu.pipeline_mode<synchronous>, transform_indices = @transform_4, window_bounds = array<i64: 128, 128>}, {pipeline_mode = #tpu.pipeline_mode<synchronous>, transform_indices = @transform_5, window_bounds = array<i64: 1, 128>}, {transform_indices = @transform_6, window_bounds = array<i64: 256, 128>}]} {
    %c0_i32 = arith.constant 0 : i32
    %0 = arith.cmpi eq, %arg1, %c0_i32 : i32
    %1 = arith.extui %0 : i1 to i32
    %c0_i32_0 = arith.constant 0 : i32
    %2 = arith.cmpi ne, %1, %c0_i32_0 : i32
    scf.if %2 {
      %cst_9 = arith.constant 0.000000e+00 : f32
      %12 = vector.broadcast %cst_9 : f32 to vector<256x128xf32>
      %c0_10 = arith.constant 0 : index
      %c0_11 = arith.constant 0 : index
      %13 = vector.load %arg9[%c0_10, %c0_11] : memref<256x128xf32, #tpu.memory_space<vmem>>, vector<256x128xf32>
      tpu.vector_store %arg9[%c0_10, %c0_11], %12 {strides = array<i32>} : memref<256x128xf32, #tpu.memory_space<vmem>>, vector<256x128xf32>,
    } else {
    }
    %c0 = arith.constant 0 : index
    %c0_1 = arith.constant 0 : index
    %3 = vector.load %arg9[%c0, %c0_1] : memref<256x128xf32, #tpu.memory_space<vmem>>, vector<256x128xf32>
    %c0_2 = arith.constant 0 : index
    %c0_3 = arith.constant 0 : index
    %4 = vector.load %arg2[%c0_2, %c0_3] : memref<256x256xbf16, #tpu.memory_space<vmem>>, vector<256x256xbf16>
    %c0_4 = arith.constant 0 : index
    %c0_5 = arith.constant 0 : index
    %5 = vector.load %arg3[%c0_4, %c0_5] : memref<256x128xbf16, #tpu.memory_space<vmem>>, vector<256x128xbf16>
    %cst = arith.constant dense<0.000000e+00> : vector<256x128xf32>
    %6 = tpu.matmul %4, %5, %cst {dimension_numbers = #tpu.dot_dimension_numbers<[1], [0], [0], [1], [0, 0, 1, 1], [], []>} : vector<256x256xbf16>, vector<256x128xbf16>, vector<256x128xf32> -> vector<256x128xf32>
    %7 = arith.addf %3, %6 : vector<256x128xf32>
    %c0_6 = arith.constant 0 : index
    %c0_7 = arith.constant 0 : index
    %8 = vector.load %arg9[%c0_6, %c0_7] : memref<256x128xf32, #tpu.memory_space<vmem>>, vector<256x128xf32>
    tpu.vector_store %arg9[%c0_6, %c0_7], %7 {strides = array<i32>} : memref<256x128xf32, #tpu.memory_space<vmem>>, vector<256x128xf32>,
    %c1_i32 = arith.constant 1 : i32
    %9 = arith.cmpi eq, %arg1, %c1_i32 : i32
    %10 = arith.extui %9 : i1 to i32
    %c0_i32_8 = arith.constant 0 : i32
    %11 = arith.cmpi ne, %10, %c0_i32_8 : i32
    scf.if %11 {
      %c0_9 = arith.constant 0 : index
      %c0_10 = arith.constant 0 : index
      %12 = vector.load %arg9[%c0_9, %c0_10] : memref<256x128xf32, #tpu.memory_space<vmem>>, vector<256x128xf32>
      %13 = arith.truncf %12 : vector<256x128xf32> to vector<256x128xbf16>
      %c0_11 = arith.constant 0 : index
      %c0_12 = arith.constant 0 : index
      %14 = vector.load %arg5[%c0_11, %c0_12] : memref<128x128xbf16, #tpu.memory_space<vmem>>, vector<128x128xbf16>
      %cst_13 = arith.constant dense<0.000000e+00> : vector<256x128xf32>
      %15 = tpu.matmul %13, %14, %cst_13 {dimension_numbers = #tpu.dot_dimension_numbers<[1], [0], [0], [1], [0, 0, 1, 1], [], []>} : vector<256x128xbf16>, vector<128x128xbf16>, vector<256x128xf32> -> vector<256x128xf32>
      %c0_14 = arith.constant 0 : index
      %c0_15 = arith.constant 0 : index
      %16 = vector.load %arg4[%c0_14, %c0_15] : memref<256x128xbf16, #tpu.memory_space<vmem>>, vector<256x128xbf16>
      %c0_16 = arith.constant 0 : index
      %c0_17 = arith.constant 0 : index
      %17 = vector.load %arg6[%c0_16, %c0_17] : memref<128x128xbf16, #tpu.memory_space<vmem>>, vector<128x128xbf16>
      %cst_18 = arith.constant dense<0.000000e+00> : vector<256x128xf32>
      %18 = tpu.matmul %16, %17, %cst_18 {dimension_numbers = #tpu.dot_dimension_numbers<[1], [0], [0], [1], [0, 0, 1, 1], [], []>} : vector<256x128xbf16>, vector<128x128xbf16>, vector<256x128xf32> -> vector<256x128xf32>
      %19 = arith.addf %15, %18 : vector<256x128xf32>
      %c0_19 = arith.constant 0 : index
      %c0_20 = arith.constant 0 : index
      %20 = vector.load %arg7[%c0_19, %c0_20] : memref<1x128xf32, #tpu.memory_space<vmem>>, vector<1x128xf32>
      %21 = vector.broadcast %20 : vector<1x128xf32> to vector<256x128xf32>
      %22 = arith.addf %19, %21 : vector<256x128xf32>
      %cst_21 = arith.constant 0.000000e+00 : f32
      %23 = vector.broadcast %cst_21 : f32 to vector<256x128xf32>
      %24 = arith.maximumf %22, %23 : vector<256x128xf32>
      %25 = arith.truncf %24 : vector<256x128xf32> to vector<256x128xbf16>
      %c0_22 = arith.constant 0 : index
      %c0_23 = arith.constant 0 : index
      %26 = vector.load %arg8[%c0_22, %c0_23] : memref<256x128xbf16, #tpu.memory_space<vmem>>, vector<256x128xbf16>
      tpu.vector_store %arg8[%c0_22, %c0_23], %25 {strides = array<i32>} : memref<256x128xbf16, #tpu.memory_space<vmem>>, vector<256x128xbf16>,
    } else {
    }
    return
  }
  func.func @transform_0(%arg0: i32, %arg1: i32) -> (i32, i32) {
    %c0_i32 = arith.constant 0 : i32
    return %arg0, %arg1 : i32, i32
  }
  func.func @transform_1(%arg0: i32, %arg1: i32) -> (i32, i32) {
    %c0_i32 = arith.constant 0 : i32
    %c0_i32_0 = arith.constant 0 : i32
    return %arg1, %c0_i32 : i32, i32
  }
  func.func @transform_2(%arg0: i32, %arg1: i32) -> (i32, i32) {
    %c0_i32 = arith.constant 0 : i32
    %c0_i32_0 = arith.constant 0 : i32
    return %arg0, %c0_i32 : i32, i32
  }
  func.func @transform_3(%arg0: i32, %arg1: i32) -> (i32, i32) {
    %c0_i32 = arith.constant 0 : i32
    %c0_i32_0 = arith.constant 0 : i32
    %c0_i32_1 = arith.constant 0 : i32
    return %c0_i32, %c0_i32_0 : i32, i32
  }
  func.func @transform_4(%arg0: i32, %arg1: i32) -> (i32, i32) {
    %c0_i32 = arith.constant 0 : i32
    %c0_i32_0 = arith.constant 0 : i32
    %c0_i32_1 = arith.constant 0 : i32
    return %c0_i32, %c0_i32_0 : i32, i32
  }
  func.func @transform_5(%arg0: i32, %arg1: i32) -> (i32, i32) {
    %c0_i32 = arith.constant 0 : i32
    %c0_i32_0 = arith.constant 0 : i32
    %c0_i32_1 = arith.constant 0 : i32
    return %c0_i32, %c0_i32_0 : i32, i32
  }
  func.func @transform_6(%arg0: i32, %arg1: i32) -> (i32, i32) {
    %c0_i32 = arith.constant 0 : i32
    %c0_i32_0 = arith.constant 0 : i32
    return %arg0, %c0_i32 : i32, i32
  }
}

</mosaic_0001>

<bundles_post_ra>
// kernel: tpu_custom_call.1
= control target key start
LH: loop header
LB: loop body
LE: loop exit
PB: predicated region body
PF: predicated region fallthrough
CT: control target
= control target key end

     0   :  { %s3834_s0 = inlined_call_operand.hbm [shape: bf16[512,512], index: 0, kind: input, shape index: {}]   ;;  %s3835_s1 = inlined_call_operand.hbm [shape: bf16[512,128], index: 1, kind: input, shape index: {}]   ;;  %s3836_s2 = inlined_call_operand.hbm [shape: bf16[512,128], index: 2, kind: input, shape index: {}]   ;;  %s3837_s3 = inlined_call_operand.hbm [shape: bf16[128,128], index: 3, kind: input, shape index: {}]   ;;  %s3838_s4 = inlined_call_operand.hbm [shape: bf16[128,128], index: 4, kind: input, shape index: {}]   ;;  %s3839_s5 = inlined_call_operand.vmem [shape: f32[1,128], index: 5, kind: input, shape index: {}]   ;;  %s3840_s6 = inlined_call_operand.hbm [shape: bf16[512,128], index: 6, kind: output, shape index: {}]  }
   0x1   :  { %3860 = sst [smem:[#allocation26_spill]] %s3834_s0 }
   0x2   :  { %3861 = sst [smem:[#allocation27_spill]] %s3835_s1 }
   0x3   :  { %3862 = sst [smem:[#allocation28_spill]] %s3837_s3 }
   0x4   :  { %3863 = sst [smem:[#allocation29_spill]] %s3839_s5 }
   0x5   :  { %3864 = sst [smem:[#allocation30_spill]] %s3840_s6 }
   0x6   :  { %11 = vsyncpa [#allocation4], 0 }
   0x7   :  { %13 = vsyncpa [#allocation4 + $0x1], 0 }
   0x8   :  { %14 = vsyncpa [#allocation7], 0 }
   0x9   :  { %16 = vsyncpa [#allocation7 + $0x1], 0 }
   0xa   :  { %17 = vsyncpa [#allocation10], 0 }
   0xb   :  { %18 = vsyncpa [#allocation5], 0 }
   0xc   :  { %20 = vsyncpa [#allocation5 + $0x1], 0  ;;  %s3231_s21 = smov 0   ;;  %s3233_s22 = smov 0  }
   0xd   :  { %s3235_s23 = smov 0   ;;  %s3237_s24 = smov 0  }
   0xe   :  { %s3239_s25 = smov 0   ;;  %s3241_s26 = smov 0  }
   0xf   :  { %s3243_s27 = smov 0   ;;  %s3245_s28 = smov 0  }
  0x10   :  { %s3247_s29 = smov 0   ;;  %s3249_s30 = smov 0  }
  0x11   :  { %s3251_s7 = smov 0   ;;  %s3253_s8 = smov 0  }
  0x12   :  { %s3255_s9 = smov 0   ;;  %s3257_s10 = smov 0  }
  0x13 LB: > { %3865 = sst [smem:[#allocation18_spill]] %s3144_s25  ;;  %s3302_s11 = sadd.s32 4294967295, %s3180_s10   ;;  %s3180_s10 = sphi %s3257_s10, %s26_s10   ;;  %s3176_s9 = sphi %s3255_s9, %s3933_s9   ;;  %s3172_s8 = sphi %s3253_s8, %s3932_s8   ;;  %s3168_s7 = sphi %s3251_s7, %s3931_s7   ;;  %s3164_s30 = sphi %s3249_s30, %s3930_s30   ;;  %s3160_s29 = sphi %s3247_s29, %s3929_s29   ;;  %s3156_s28 = sphi %s3245_s28, %s3928_s28   ;;  %s3152_s27 = sphi %s3243_s27, %s3927_s27   ;;  %s3148_s26 = sphi %s3241_s26, %s3919_s26   ;;  %s3144_s25 = sphi %s3239_s25, %s3926_s25   ;;  %s3140_s24 = sphi %s3237_s24, %s3917_s24   ;;  %s3136_s23 = sphi %s3235_s23, %s3925_s23   ;;  %s3132_s22 = sphi %s3233_s22, %s3924_s22   ;;  %s3128_s21 = sphi %s3231_s21, %s3923_s21  }
  0x14   : > { %3866 = sst [smem:[#allocation19_spill]] %s3148_s26  ;;  %p2038_p0 = scmp.ge.s32.totalorder %s3180_s10, 1 }
  0x15   : > { %3867 = sst [smem:[#allocation20_spill]] %s3164_s30  ;;  %p3842_p1 = scmp.eq.s32.totalorder %s3302_s11, 0 }
  0x16   : > { %3868 = sst [smem:[#allocation21_spill]] %s3168_s7  ;;  %p212_p3 = scmp.lt.s32.totalorder %s3180_s10, 5 }
  0x17   : > { %s3182_s13 = smov [#allocation9]   ;;  %s3871_s3 = sld [smem:[#allocation28_spill]] }
  0x18   : > { %p3308_p4 = pnand %p2038_p0, %p212_p3  ;;  %s224_s14 = sshll.u32 %s3182_s13, 4  ;;  %s225_s14 = int_to_ptr.vmem [resolvable:$true] %s224_s14 }
  0x1a   : > { %s3869_s12 = scalar_select %p3308_p4, 1, 0 }
  0x1b   : > { %p2631_p5 = pneg %p3308_p4 }
  0x1d   : > { %p3316_p6 = pnand %p2631_p5, %p3842_p1  ;;  %s2876_s18 = scalar_lea.hbm %s3871_s3, 1024 }
  0x1e   : > { %p2877_p7 = scmp.ne.s32.totalorder %s3871_s3, %s2876_s18  ;;  %p2883_p11 = scmp.lt.u32.totalorder %s2876_s18, %s3871_s3 }
  0x1f   : > { %p3856_p8 = pneg %p3316_p6 }
  0x21   : > { %p2879_p9 = pnand %p3856_p8, %p2877_p7 }
  0x23   : > { %p2880_p10 = pneg %p2879_p9 }
  0x25   : > { %p2885_p12 = pnand %p2883_p11, %p2880_p10 }
  0x27   : > { %2888 = shalt.err (!%p2885_p12)
}
  0x28   : > { %s2889_s16 = scalar_lea.vmem %s225_s14, 1024  ;;  %p2897_p5 = scmp.lt.s32.totalorder %s225_s14, %s225_s14 }
  0x29   : > { %p2890_p13 = scmp.ne.s32.totalorder %s225_s14, %s2889_s16  ;;  %p2898_p2 = scmp.lt.s32.totalorder %s2889_s16, %s2889_s16 }
  0x2b   : > { %p2892_p0 = pnand %p2890_p13, %p3856_p8  ;;  %p2899_p1 = por %p2898_p2, %p2897_p5 }
  0x2d   : > { %p2893_p3 = pneg %p2892_p0 }
  0x2f   : > { %p2900_p4 = pnand %p2899_p1, %p2893_p3 }
  0x31   : > { %2903 = shalt.err (!%p2900_p4)
}
  0x32   : > { %s3844_s17 = smov 64   ;;  %s3846_s6 = smov 4  }
  0x33   : > { %2634 = dma.hbm_to_vmem [thread:$0]  (!%p3316_p6), %s3871_s3, 1024, %s225_s14, [#allocation10], %s3844_s17, %s3844_s17, %s3846_s6  }
  0x34   : > { %s35_s20 = sadd.s32 1, %s3172_s8  ;;  %s38_s13 = sadd.s32 1, %s3176_s9 }
  0x35   : > { %p36_p1 = scmp.ge.s32.totalorder %s35_s20, 2  ;;  %p3855_p2 = scmp.eq.s32.totalorder %s3180_s10, 0 }
  0x36   : > { %s73_s16 = sadd.s32 1, %s3148_s26  ;;  %p80_p4 = scmp.ne.s32.totalorder %s3148_s26, %s3144_s25 }
  0x37   : > { %s3935_s20 = smov (%p36_p1, %s35_s20), 0  ;;  %s3937_s13 = smov (!%p36_p1, %s38_s13), %s3176_s9 }
  0x38   : > { %3872 = sst [smem:[#allocation22_spill]] %s3935_s20  ;;  %s43_s7 = ssub.s32 %s3172_s8, %s3935_s20 }
  0x39   : > { %p3358_p7 = por %p80_p4, %p3855_p2  ;;  %p40_p9 = scmp.ge.s32.totalorder %s3937_s13, 2 }
  0x3a   : > { %p71_p10 = scmp.eq.s32.totalorder %s43_s7, 0  ;;  %p86_p11 = scmp.ne.s32.totalorder %s3144_s25, %s3140_s24 }
  0x3b   : > { %p3854_p12 = scmp.lt.s32.totalorder %s3180_s10, 4  ;;  %s3939_s13 = smov (%p40_p9, %s3937_s13), 0 }
  0x3c   : > { %3874 = sst [smem:[#allocation23_spill]] %s3939_s13  ;;  %s3372_s19 = ssub.s32 %s3176_s9, %s3939_s13 }
  0x3d   : > { %s3368_s18 = scalar_select %p71_p10, %s3148_s26, %s73_s16  }
  0x3e   : > { %p3876_p13 = scmp.eq.s32.totalorder %s3302_s11, 0  ;;  %s44_s6 = sor.u32 %s43_s7, %s3372_s19 }
  0x3f   : > { %3875 = sst [smem:[#allocation24_spill]] %s3368_s18  ;;  %p3382_p5 = scmp.eq.s32.totalorder %s44_s6, 0 }
  0x40   : > { %p3376_p0 = por %p86_p11, %p3876_p13  ;;  %s278_s3 = sand.u32 1, %s3180_s10  }
  0x41   : > { %s3879_s24 = scalar_select %p3382_p5, 1, 0 }
  0x42   : > { %s3877_s17 = scalar_select %p3376_p0, 1, 0 }
  0x43   : > { %s280_s20 = sand.u32 1, %s3148_s26   ;;  %s2181_s16 = sshll.u32 %s3172_s8, 11 }
  0x44   : > { %3878 = sst [smem:[#allocation25_spill]] %s3877_s17  ;;  %s2047_s5 = sshll.u32 %s280_s20, 7 }
  0x45   : > { %s3880_s1 = sld [smem:[#allocation27_spill]]  ;;  %s282_s25 = scalar_lea.vmem [#allocation6], %s2047_s5 }
  0x46   : > { %s289_s7 = sshll.u32 %s282_s25, 4  ;;  %p3398_p1 = pnand %p3854_p12, %p3358_p7  ;;  %s3402_s7 = int_to_ptr.vmem [resolvable:$true] %s289_s7 }
  0x47   : > { %s3185_s20 = smov [#allocation11]   ;;  %s3406_s18 = scalar_lea.sflag [#allocation7], %s278_s3 }
  0x48   : > { %s3404_s13 = sshll.u32 %s3185_s20, 4  ;;  %p2906_p9 = pneg %p3398_p1  ;;  %s238_s13 = int_to_ptr.vmem [resolvable:$true] %s3404_s13 }
  0x4b   : > { %s3392_s30 = scalar_lea.hbm %s3880_s1, %s2181_s16  ;;  %s2909_s14 = scalar_lea.hbm %s3880_s1, 4096 }
  0x4c   : > { %s2904_s16 = scalar_lea.hbm %s3392_s30, 2048  ;;  %p2910_p11 = scmp.lt.u32.totalorder %s3392_s30, %s3880_s1 }
  0x4d   : > { %p2905_p4 = scmp.ne.s32.totalorder %s3392_s30, %s2904_s16  ;;  %p2911_p13 = scmp.lt.u32.totalorder %s2909_s14, %s2904_s16 }
  0x4e   : > { %p2913_p12 = scmp.lt.u32.totalorder %s2904_s16, %s3392_s30 }
  0x4f   : > { %p2907_p10 = pnand %p2906_p9, %p2905_p4  ;;  %p2912_p3 = por %p2911_p13, %p2910_p11 }
  0x51   : > { %p2908_p7 = pneg %p2907_p10  ;;  %p2914_p2 = por %p2913_p12, %p2912_p3 }
  0x53   : > { %p2915_p8 = pnand %p2914_p2, %p2908_p7 }
  0x55   : > { %2918 = shalt.err (!%p2915_p8)
}
  0x56   : > { %s2919_s3 = scalar_lea.vmem %s3402_s7, 2048  ;;  %s3186_s20 = smov [#allocation6]  }
  0x57   : > { %p2920_p4 = scmp.ne.s32.totalorder %s3402_s7, %s2919_s3  ;;  %s2924_s5 = sshll.u32 %s3186_s20, 4  ;;  %s2925_s5 = int_to_ptr.vmem [resolvable:$false] %s2924_s5 }
  0x58   : > { %s2926_s26 = scalar_lea.vmem %s2925_s5, 4096  ;;  %p2927_p5 = scmp.lt.s32.totalorder %s3402_s7, %s2925_s5 }
  0x59   : > { %p2922_p10 = pnand %p2920_p4, %p2906_p9  ;;  %p2928_p11 = scmp.lt.s32.totalorder %s2926_s26, %s2919_s3 }
  0x5b   : > { %p2923_p0 = pneg %p2922_p10  ;;  %p2929_p13 = por %p2928_p11, %p2927_p5 }
  0x5d   : > { %p2930_p12 = pnand %p2929_p13, %p2923_p0 }
  0x5f   : > { %2933 = shalt.err (!%p2930_p12)
}
  0x60   : > { %s3882_s17 = smov 4   ;;  %s3883_s16 = smov 64  }
  0x61   : > { %2644 = dma.hbm_to_vmem [thread:$0]  (!%p3398_p1), %s3392_s30, 2048, %s3402_s7, %s3406_s18, %s3883_s16, %s3883_s16, %s3882_s17  }
  0x62   : > { %s2934_s20 = scalar_lea.hbm %s3838_s4, 1024  ;;  %p3884_p2 = pneg %p3316_p6 }
  0x63   : > { %p2935_p8 = scmp.ne.s32.totalorder %s3838_s4, %s2934_s20  ;;  %p2941_p5 = scmp.lt.u32.totalorder %s2934_s20, %s3838_s4 }
  0x65   : > { %p2937_p0 = pnand %p2935_p8, %p3884_p2 }
  0x67   : > { %p2938_p3 = pneg %p2937_p0 }
  0x69   : > { %p2943_p9 = pnand %p2941_p5, %p2938_p3 }
  0x6b   : > { %2946 = shalt.err (!%p2943_p9)
}
  0x6c   : > { %s2947_s30 = scalar_lea.vmem %s238_s13, 1024  ;;  %p3885_p7 = pmov %p3884_p2 }
  0x6d   : > { %p2948_p1 = scmp.ne.s32.totalorder %s238_s13, %s2947_s30  ;;  %p2955_p11 = scmp.lt.s32.totalorder %s238_s13, %s238_s13 }
  0x6e   : > { %p2956_p13 = scmp.lt.s32.totalorder %s2947_s30, %s2947_s30 }
  0x6f   : > { %p2950_p4 = pnand %p2948_p1, %p3885_p7 }
  0x70   : > { %p2957_p12 = por %p2956_p13, %p2955_p11 }
  0x71   : > { %p2951_p10 = pneg %p2950_p4 }
  0x73   : > { %p2958_p2 = pnand %p2957_p12, %p2951_p10 }
  0x75   : > { %2961 = shalt.err (!%p2958_p2)
}
  0x76   : > { %2637 = dma.hbm_to_vmem [thread:$0]  (!%p3316_p6), %s3838_s4, 1024, %s238_s13, [#allocation10], %s3883_s16, %s3883_s16, %s3882_s17  }
  0x77   : > { %s47_s15 = sadd.s32 1, %s3160_s29  ;;  %p3886_p8 = scmp.ne.s32.totalorder %s3879_s24, 0 }
  0x78   : > { %p54_p0 = scmp.ne.s32.totalorder %s3160_s29, %s3156_s28  ;;  %p60_p3 = scmp.ne.s32.totalorder %s3156_s28, %s3152_s27 }
  0x79   : > { %s3465_s14 = scalar_select %p3886_p8, %s3160_s29, %s47_s15  }
  0x7a   : > { %s254_s20 = sand.u32 1, %s3160_s29   ;;  %s2044_s3 = sshll.u32 %s3172_s8, 1 }
  0x7b   : > { %p3887_p5 = scmp.eq.s32.totalorder %s3180_s10, 0  ;;  %p3888_p1 = scmp.eq.s32.totalorder %s3302_s11, 0 }
  0x7c   : > { %s2042_s6 = sshll.u32 %s254_s20, 8  ;;  %s2180_s26 = sshll.u32 %s3176_s9, 7 }
  0x7d   : > { %p56_p9 = por %p3887_p5, %p54_p0  ;;  %p3477_p7 = por %p3888_p1, %p60_p3 }
  0x7e   : > { %s265_s30 = sadd.s32 %s2180_s26, %s2044_s3  ;;  %s258_s13 = scalar_lea.vmem [#allocation3], %s2042_s6 }
  0x7f   : > { %s268_s7 = sshll.u32 %s258_s13, 4  ;;  %s2046_s24 = sshll.u32 %s265_s30, 6  ;;  %s3482_s7 = int_to_ptr.vmem [resolvable:$true] %s268_s7 }
  0x80   : > { %s3890_s0 = sld [smem:[#allocation26_spill]]  ;;  %p3891_p6 = scmp.lt.s32.totalorder %s3180_s10, 4 }
  0x81   : > { %s3495_s3 = scalar_lea.sflag [#allocation4], %s254_s20 }
  0x82   : > { %p3491_p4 = pnand %p3891_p6, %p56_p9 }
  0x84   : > { %p2964_p11 = pneg %p3491_p4 }
  0x86   : > { %s3487_s27 = scalar_lea.hbm %s3890_s0, %s2046_s24  ;;  %s2967_s13 = scalar_lea.hbm %s3890_s0, 16384 }
  0x87   : > { %s2962_s6 = scalar_lea.hbm %s3487_s27, 4096  ;;  %p2968_p2 = scmp.lt.u32.totalorder %s3487_s27, %s3890_s0 }
  0x88   : > { %p2963_p10 = scmp.ne.s32.totalorder %s3487_s27, %s2962_s6  ;;  %p2969_p8 = scmp.lt.u32.totalorder %s2967_s13, %s2962_s6 }
  0x89   : > { %p2971_p3 = scmp.lt.u32.totalorder %s2962_s6, %s3487_s27 }
  0x8a   : > { %p2965_p13 = pnand %p2964_p11, %p2963_p10  ;;  %p2970_p0 = por %p2969_p8, %p2968_p2 }
  0x8c   : > { %p2966_p12 = pneg %p2965_p13  ;;  %p2972_p5 = por %p2971_p3, %p2970_p0 }
  0x8e   : > { %p2973_p9 = pnand %p2972_p5, %p2966_p12 }
  0x90   : > { %2976 = shalt.err (!%p2973_p9)
}
  0x91   : > { %s2977_s20 = scalar_lea.vmem %s3482_s7, 4096  ;;  %s3187_s15 = smov [#allocation3]  }
  0x92   : > { %p2978_p1 = scmp.ne.s32.totalorder %s3482_s7, %s2977_s20  ;;  %s2982_s26 = sshll.u32 %s3187_s15, 4  ;;  %s2983_s26 = int_to_ptr.vmem [resolvable:$false] %s2982_s26 }
  0x93   : > { %s2984_s30 = scalar_lea.vmem %s2983_s26, 8192  ;;  %p2985_p13 = scmp.lt.s32.totalorder %s3482_s7, %s2983_s26 }
  0x94   : > { %p2980_p6 = pnand %p2978_p1, %p2964_p11  ;;  %p2986_p2 = scmp.lt.s32.totalorder %s2984_s30, %s2977_s20 }
  0x96   : > { %p2981_p10 = pneg %p2980_p6  ;;  %p2987_p8 = por %p2986_p2, %p2985_p13 }
  0x98   : > { %p2988_p0 = pnand %p2987_p8, %p2981_p10 }
  0x9a   : > { %2991 = shalt.err (!%p2988_p0)
}
  0x9b   : > { %s3188_s6 = smov 256   ;;  %s3189_s13 = smov 128  }
  0x9c   : > { %s3190_s24 = smov 8   ;;  %s2037_s25 = sadd.s32 4294967294, %s3180_s10  }
  0x9d   : > { %2641 = dma.hbm_to_vmem [thread:$0]  (!%p3491_p4), %s3487_s27, 4096, %s3482_s7, %s3495_s3, %s3188_s6, %s3189_s13, %s3190_s24  }
  0x9e   : > { %s99_s20 = sadd.s32 1, %s3136_s23  ;;  %p3893_p11 = scmp.eq.s32.totalorder %s3372_s19, 0 }
  0x9f   : > { %p106_p12 = scmp.ne.s32.totalorder %s3136_s23, %s3132_s22  ;;  %p112_p3 = scmp.ne.s32.totalorder %s3132_s22, %s3128_s21 }
  0xa0   : > { %s3528_s15 = scalar_select %p3893_p11, %s3136_s23, %s99_s20  }
  0xa1   : > { %p205_p5 = scmp.eq.s32.totalorder %s2037_s25, 3  ;;  %s301_s26 = sand.u32 1, %s3136_s23  }
  0xa2   : > { %p3894_p9 = scmp.eq.s32.totalorder %s3180_s10, 0  ;;  %p3895_p6 = scmp.eq.s32.totalorder %s3302_s11, 0 }
  0xa3   : > { %p3897_p13 = scmp.eq.s32.totalorder %s3302_s11, 3  ;;  %p3549_p4 = por %p205_p5, %p112_p3 }
  0xa4   : > { %p108_p1 = por %p106_p12, %p3894_p9  ;;  %p3539_p10 = por %p112_p3, %p3895_p6 }
  0xa5   : > { %p3545_p2 = por %p3897_p13, %p106_p12  ;;  %s2050_s7 = sshll.u32 %s301_s26, 7 }
  0xa6   : > { %s3896_s30 = scalar_select %p3539_p10, 1, 0 }
  0xa7   : > { %s3898_s1 = scalar_select %p3545_p2, 1, 0 }
  0xa8   : > { %s3899_s19 = scalar_select %p3549_p4, 1, 0 }
  0xa9   : > { %s2182_s27 = sshll.u32 %s3176_s9, 11  ;;  %s303_s24 = scalar_lea.vmem [#allocation8], %s2050_s7 }
  0xaa   : > { %s3557_s13 = scalar_lea.hbm %s3836_s2, %s2182_s27  ;;  %s310_s25 = sshll.u32 %s303_s24, 4  ;;  %s3565_s25 = int_to_ptr.vmem [resolvable:$true] %s310_s25 }
  0xab   : > { %p3900_p8 = scmp.lt.s32.totalorder %s3180_s10, 4  ;;  %s2992_s26 = scalar_lea.hbm %s3557_s13, 2048 }
  0xac   : > { %p2993_p11 = scmp.ne.s32.totalorder %s3557_s13, %s2992_s26  ;;  %s2997_s3 = scalar_lea.hbm %s3836_s2, 4096 }
  0xad   : > { %p3561_p0 = pnand %p3900_p8, %p108_p1  ;;  %p2998_p9 = scmp.lt.u32.totalorder %s3557_s13, %s3836_s2 }
  0xae   : > { %p2999_p1 = scmp.lt.u32.totalorder %s2997_s3, %s2992_s26  ;;  %p3001_p13 = scmp.lt.u32.totalorder %s2992_s26, %s3557_s13 }
  0xaf   : > { %p2994_p12 = pneg %p3561_p0 }
  0xb0   : > { %p3000_p6 = por %p2999_p1, %p2998_p9 }
  0xb1   : > { %p2995_p3 = pnand %p2994_p12, %p2993_p11 }
  0xb2   : > { %p3002_p8 = por %p3001_p13, %p3000_p6 }
  0xb3   : > { %p2996_p5 = pneg %p2995_p3 }
  0xb5   : > { %p3003_p4 = pnand %p3002_p8, %p2996_p5 }
  0xb7   : > { %3006 = shalt.err (!%p3003_p4)
}
  0xb8   : > { %s3007_s0 = scalar_lea.vmem %s3565_s25, 2048  ;;  %s3191_s27 = smov [#allocation8]  }
  0xb9   : > { %p3008_p11 = scmp.ne.s32.totalorder %s3565_s25, %s3007_s0  ;;  %s3012_s7 = sshll.u32 %s3191_s27, 4  ;;  %s3013_s7 = int_to_ptr.vmem [resolvable:$false] %s3012_s7 }
  0xba   : > { %s3014_s6 = scalar_lea.vmem %s3013_s7, 4096  ;;  %p3015_p10 = scmp.lt.s32.totalorder %s3565_s25, %s3013_s7 }
  0xbb   : > { %p3010_p3 = pnand %p3008_p11, %p2994_p12  ;;  %p3016_p9 = scmp.lt.s32.totalorder %s3014_s6, %s3007_s0 }
  0xbd   : > { %p3011_p2 = pneg %p3010_p3  ;;  %p3017_p1 = por %p3016_p9, %p3015_p10 }
  0xbf   : > { %p3018_p6 = pnand %p3017_p1, %p3011_p2 }
  0xc1   : > { %3021 = shalt.err (!%p3018_p6)
}
  0xc2   : > { %2647 = dma.hbm_to_vmem [thread:$0]  (!%p3561_p0), %s3557_s13, 2048, %s3565_s25, %s3406_s18, %s3883_s16, %s3883_s16, %s3882_s17  }
  0xc3   : > { %p3902_p4 = scmp.ne.s32.totalorder %s3869_s12, 0 }
  0xc4   : > { %s324_s26 = sand.u32 (!%p3902_p4), 1, %s3156_s28  }
  0xc5   : > { %322 = sbr.rel (%p3902_p4) target bundleno = 870 (0x366), region = 44  ;;  %s2054_s3 = sshll.u32 (!%p3902_p4), %s324_s26, 8 }
  0xc6   : > { %s325_s0 = scalar_lea.sflag (!%p3902_p4), [#allocation4], %s324_s26  ;;  %s3599_s24 = scalar_lea.vmem (!%p3902_p4), [#allocation3], %s2054_s3 }
  0xcc   : > { %3107 = dma.done.wait (%p3477_p7), %s325_s0, 4096  }
  0xcd   : > { %3109 = vsyncadd (%p3477_p7), %s325_s0, 4294963200  ;;  %s3903_s20 = sld [smem:[#allocation18_spill]]  ;;  %s3904_s27 = sld [smem:[#allocation25_spill]] }
  0xce   : > { %s333_s7 = sand.u32 1, %s3302_s11  }
  0xcf   : > { %s334_s12 = scalar_lea.sflag [#allocation7], %s333_s7 }
  0xd3   : > { %s335_s18 = sand.u32 1, %s3903_s20   ;;  %p3905_p10 = scmp.ne.s32.totalorder %s3904_s27, 0 }
  0xd4   : > { %s2055_s17 = sshll.u32 %s335_s18, 7 }
  0xd5   : > { %s3607_s16 = scalar_lea.vmem [#allocation6], %s2055_s17 }
  0xd6   : > { %3111 = dma.done.wait (%p3905_p10), %s334_s12, 2048  }
  0xd7   : > { %3113 = vsyncadd (%p3905_p10), %s334_s12, 4294965248  ;;  %s344_s13 = sand.u32 1, %s3132_s22   ;;  %p3906_p7 = scmp.ne.s32.totalorder %s3896_s30, 0 }
  0xd8   : > { %s2056_s5 = sshll.u32 %s344_s13, 7 }
  0xd9   : > { %s3616_s25 = scalar_lea.vmem [#allocation8], %s2056_s5 }
  0xda   : > { %3115 = dma.done.wait (%p3906_p7), %s334_s12, 2048  }
  0xdb   : > { %3117 = vsyncadd (%p3906_p7), %s334_s12, 4294965248  ;;  %p3907_p2 = scmp.eq.s32.totalorder %s3302_s11, 0 }
  0xdd   : > { %3119 = dma.done.wait (%p3907_p2), [#allocation10], 2048   ;;  %p3908_p0 = pmov %p3907_p2 }
  0xde   : > { %s3626_s6 = scalar_lea.vmem [#allocation12], %s2056_s5  ;;  %s3909_s26 = sld [smem:[#allocation20_spill]] }
  0xdf   : > { %3121 = vsyncadd (%p3908_p0), [#allocation10], 4294965248 }
  0xe4   : > { %p2060_p12 = scmp.ne.s32.totalorder %s3909_s26, 0 }
  0xe5   : > { %v3192_v0 = vmov (!%p2060_p12), 0.0  }
  0xe6   : > { %402 = sbr.rel (%p2060_p12) target bundleno = 246 (0xf6), region = 68  ;;  %403 = vst [vmem:[#allocation2] sm:$0xff] (!%p2060_p12), %v3192_v0  ;;  %404 = vst [vmem:[#allocation2 + $0x8] sm:$0xff] (!%p2060_p12), %v3192_v0 }
  0xe7   : > { %405 = vst [vmem:[#allocation2 + $0x10] sm:$0xff] (!%p2060_p12), %v3192_v0  ;;  %406 = vst [vmem:[#allocation2 + $0x18] sm:$0xff] (!%p2060_p12), %v3192_v0 }
  0xe8   : > { %407 = vst [vmem:[#allocation2 + $0x20] sm:$0xff] (!%p2060_p12), %v3192_v0  ;;  %408 = vst [vmem:[#allocation2 + $0x28] sm:$0xff] (!%p2060_p12), %v3192_v0 }
  0xe9   : > { %409 = vst [vmem:[#allocation2 + $0x30] sm:$0xff] (!%p2060_p12), %v3192_v0  ;;  %410 = vst [vmem:[#allocation2 + $0x38] sm:$0xff] (!%p2060_p12), %v3192_v0 }
  0xea   : > { %411 = vst [vmem:[#allocation2 + $0x40] sm:$0xff] (!%p2060_p12), %v3192_v0  ;;  %412 = vst [vmem:[#allocation2 + $0x48] sm:$0xff] (!%p2060_p12), %v3192_v0 }
  0xeb   : > { %413 = vst [vmem:[#allocation2 + $0x50] sm:$0xff] (!%p2060_p12), %v3192_v0  ;;  %414 = vst [vmem:[#allocation2 + $0x58] sm:$0xff] (!%p2060_p12), %v3192_v0 }
  0xec   : > { %415 = vst [vmem:[#allocation2 + $0x60] sm:$0xff] (!%p2060_p12), %v3192_v0  ;;  %416 = vst [vmem:[#allocation2 + $0x68] sm:$0xff] (!%p2060_p12), %v3192_v0 }
  0xed   : > { %417 = vst [vmem:[#allocation2 + $0x70] sm:$0xff] %v3192_v0  ;;  %418 = vst [vmem:[#allocation2 + $0x78] sm:$0xff] %v3192_v0 }
  0xee   : > { %419 = vst [vmem:[#allocation2 + $0x80] sm:$0xff] %v3192_v0  ;;  %420 = vst [vmem:[#allocation2 + $0x88] sm:$0xff] %v3192_v0 }
  0xef   : > { %421 = vst [vmem:[#allocation2 + $0x90] sm:$0xff] %v3192_v0  ;;  %422 = vst [vmem:[#allocation2 + $0x98] sm:$0xff] %v3192_v0 }
  0xf0   : > { %423 = vst [vmem:[#allocation2 + $0xa0] sm:$0xff] %v3192_v0  ;;  %424 = vst [vmem:[#allocation2 + $0xa8] sm:$0xff] %v3192_v0 }
  0xf1   : > { %425 = vst [vmem:[#allocation2 + $0xb0] sm:$0xff] %v3192_v0  ;;  %426 = vst [vmem:[#allocation2 + $0xb8] sm:$0xff] %v3192_v0 }
  0xf2   : > { %427 = vst [vmem:[#allocation2 + $0xc0] sm:$0xff] %v3192_v0  ;;  %428 = vst [vmem:[#allocation2 + $0xc8] sm:$0xff] %v3192_v0 }
  0xf3   : > { %429 = vst [vmem:[#allocation2 + $0xd0] sm:$0xff] %v3192_v0  ;;  %430 = vst [vmem:[#allocation2 + $0xd8] sm:$0xff] %v3192_v0 }
  0xf4   : > { %431 = vst [vmem:[#allocation2 + $0xe0] sm:$0xff] %v3192_v0  ;;  %432 = vst [vmem:[#allocation2 + $0xe8] sm:$0xff] %v3192_v0 }
  0xf5   : > { %433 = vst [vmem:[#allocation2 + $0xf0] sm:$0xff] %v3192_v0  ;;  %434 = vst [vmem:[#allocation2 + $0xf8] sm:$0xff] %v3192_v0 }
  0xf6 PF: > { %v2780_v1 = vld [vmem:[%s3607_s16 + $0x40] sm:$0xff]   ;;  %v2782_v3 = vld [vmem:[%s3607_s16 + $0x48] sm:$0xff]   ;;  %v2784_v5 = vld [vmem:[%s3607_s16 + $0x50] sm:$0xff]   ;;  %s3910_s11 = sld [smem:[#allocation20_spill]] }
  0xf7   : > { %v2781_v2 = vld [vmem:[%s3607_s16] sm:$0xff]   ;;  %2311 = vmatprep.subr.bf16.mxu0 %v2780_v1  ;;  %2567 = vmatprep.subr.bf16.mxu1 %v2780_v1  ;;  %v2783_v4 = vld [vmem:[%s3607_s16 + $0x8] sm:$0xff]   ;;  %v2785_v6 = vld [vmem:[%s3607_s16 + $0x10] sm:$0xff]  }
  0xf8   : > { %2312 = vmatpush3.bf16.msra.mxu0 %v2781_v2  ;;  %2575 = vmatpush3.bf16.msra.mxu1 %v2781_v2  ;;  %v2786_v7 = vld [vmem:[%s3607_s16 + $0x58] sm:$0xff]   ;;  %v2788_v9 = vld [vmem:[%s3607_s16 + $0x60] sm:$0xff]   ;;  %v2790_v11 = vld [vmem:[%s3607_s16 + $0x68] sm:$0xff]  }
  0xf9   : > { %2313 = vmatprep.subr.bf16.mxu0 %v2782_v3  ;;  %2568 = vmatprep.subr.bf16.mxu1 %v2782_v3  ;;  %v2787_v8 = vld [vmem:[%s3607_s16 + $0x18] sm:$0xff]   ;;  %v2789_v10 = vld [vmem:[%s3607_s16 + $0x20] sm:$0xff]   ;;  %v2791_v14 = vld [vmem:[%s3607_s16 + $0x28] sm:$0xff]  }
  0xfa   : > { %v2798_v12 = vld [vmem:[%s3599_s24 + $0x4] ss:$8 sps:$4 sm:$0xff]   ;;  %v2792_v15 = vld [vmem:[%s3607_s16 + $0x70] sm:$0xff]   ;;  %v2794_v17 = vld [vmem:[%s3607_s16 + $0x78] sm:$0xff]  }
  0xfb   : > { %v2801_v13 = vld [vmem:[%s3599_s24 + $0x84] ss:$8 sps:$4 sm:$0xff]   ;;  %819 = vmatprep.mubr.bf16.mxu0 %v2798_v12  ;;  %v2793_v16 = vld [vmem:[%s3607_s16 + $0x30] sm:$0xff]   ;;  %v2795_v18 = vld [vmem:[%s3607_s16 + $0x38] sm:$0xff]  }
  0xfc   : > { %2314 = vmatpush3.bf16.msra.mxu0 %v2783_v4  ;;  %2576 = vmatpush3.bf16.msra.mxu1 %v2783_v4  ;;  %v2796_v19 = vld [vmem:[%s3599_s24] ss:$8 sps:$4 sm:$0xff]   ;;  %v2802_v21 = vld [vmem:[%s3599_s24 + $0x14] ss:$8 sps:$4 sm:$0xff]   ;;  %v2806_v23 = vld [vmem:[%s3599_s24 + $0x10] ss:$8 sps:$4 sm:$0xff]  }
  0xfd   : > { %2315 = vmatprep.subr.bf16.mxu0 %v2784_v5  ;;  %2569 = vmatprep.subr.bf16.mxu1 %v2784_v5  ;;  %v2799_v20 = vld [vmem:[%s3599_s24 + $0x80] ss:$8 sps:$4 sm:$0xff]   ;;  %v2804_v22 = vld [vmem:[%s3599_s24 + $0x94] ss:$8 sps:$4 sm:$0xff]   ;;  %v2807_v24 = vld [vmem:[%s3599_s24 + $0x90] ss:$8 sps:$4 sm:$0xff]  }
  0xfe   : > { %883 = vmatprep.mubr.bf16.mxu1 %v2801_v13  ;;  %v2808_v25 = vld [vmem:[%s3599_s24 + $0x24] ss:$8 sps:$4 sm:$0xff]   ;;  %v2812_v27 = vld [vmem:[%s3599_s24 + $0x20] ss:$8 sps:$4 sm:$0xff]   ;;  %v2814_v29 = vld [vmem:[%s3599_s24 + $0x34] ss:$8 sps:$4 sm:$0xff]  }
  0xff   : > { %v2810_v26 = vld [vmem:[%s3599_s24 + $0xa4] ss:$8 sps:$4 sm:$0xff]   ;;  %v2813_v28 = vld [vmem:[%s3599_s24 + $0xa0] ss:$8 sps:$4 sm:$0xff]   ;;  %v2816_v30 = vld [vmem:[%s3599_s24 + $0xb4] ss:$8 sps:$4 sm:$0xff]  }
 0x100   : > { %2316 = vmatpush3.bf16.msra.mxu0 %v2785_v6  ;;  %2577 = vmatpush3.bf16.msra.mxu1 %v2785_v6  ;;  %v2818_v31 = vld [vmem:[%s3599_s24 + $0x30] ss:$8 sps:$4 sm:$0xff]   ;;  %v2820_v33 = vld [vmem:[%s3599_s24 + $0x44] ss:$8 sps:$4 sm:$0xff]   ;;  %v2824_v35 = vld [vmem:[%s3599_s24 + $0x40] ss:$8 sps:$4 sm:$0xff]  }
 0x101   : > { %2317 = vmatprep.subr.bf16.mxu0 %v2786_v7  ;;  %2570 = vmatprep.subr.bf16.mxu1 %v2786_v7  ;;  %v2819_v32 = vld [vmem:[%s3599_s24 + $0xb0] ss:$8 sps:$4 sm:$0xff]   ;;  %v2822_v34 = vld [vmem:[%s3599_s24 + $0xc4] ss:$8 sps:$4 sm:$0xff]   ;;  %v2825_v36 = vld [vmem:[%s3599_s24 + $0xc0] ss:$8 sps:$4 sm:$0xff]  }
 0x102   : > { %v2826_v37 = vld [vmem:[%s3599_s24 + $0x54] ss:$8 sps:$4 sm:$0xff]   ;;  %v2830_v39 = vld [vmem:[%s3599_s24 + $0x50] ss:$8 sps:$4 sm:$0xff]   ;;  %v2832_v41 = vld [vmem:[%s3599_s24 + $0x64] ss:$8 sps:$4 sm:$0xff]  }
 0x103   : > { %v2828_v38 = vld [vmem:[%s3599_s24 + $0xd4] ss:$8 sps:$4 sm:$0xff]   ;;  %v2831_v40 = vld [vmem:[%s3599_s24 + $0xd0] ss:$8 sps:$4 sm:$0xff]   ;;  %v2834_v42 = vld [vmem:[%s3599_s24 + $0xe4] ss:$8 sps:$4 sm:$0xff]  }
 0x104   : > { %2318 = vmatpush3.bf16.msra.mxu0 %v2787_v8  ;;  %2578 = vmatpush3.bf16.msra.mxu1 %v2787_v8  ;;  %v2836_v43 = vld [vmem:[%s3599_s24 + $0x60] ss:$8 sps:$4 sm:$0xff]   ;;  %v2838_v45 = vld [vmem:[%s3599_s24 + $0x74] ss:$8 sps:$4 sm:$0xff]   ;;  %v2842_v47 = vld [vmem:[%s3599_s24 + $0x70] ss:$8 sps:$4 sm:$0xff]  }
 0x105   : > { %2319 = vmatprep.subr.bf16.mxu0 %v2788_v9  ;;  %2571 = vmatprep.subr.bf16.mxu1 %v2788_v9  ;;  %v2837_v44 = vld [vmem:[%s3599_s24 + $0xe0] ss:$8 sps:$4 sm:$0xff]   ;;  %v2840_v46 = vld [vmem:[%s3599_s24 + $0xf4] ss:$8 sps:$4 sm:$0xff]   ;;  %v2843_v48 = vld [vmem:[%s3599_s24 + $0xf0] ss:$8 sps:$4 sm:$0xff]  }
 0x106   : > { %v435_v51 = vld [vmem:[#allocation2] sm:$0xff]  ;;  %v436_v59 = vld [vmem:[#allocation2 + $0x8] sm:$0xff]  ;;  %v437_v7 = vld [vmem:[#allocation2 + $0x10] sm:$0xff]  ;;  %p2109_p5 = scmp.ne.s32.totalorder %s3910_s11, 1 }
 0x107   : > { %v451_v53 = vld [vmem:[#allocation2 + $0x80] sm:$0xff]  ;;  %v452_v61 = vld [vmem:[#allocation2 + $0x88] sm:$0xff]  ;;  %v453_v9 = vld [vmem:[#allocation2 + $0x90] sm:$0xff]  ;;  %s3911_s0 = sld [smem:[#allocation29_spill]] (!%p2109_p5) }
 0x108   : > { %2320 = vmatpush3.bf16.msra.mxu0 %v2789_v10  ;;  %2579 = vmatpush3.bf16.msra.mxu1 %v2789_v10 }
 0x109   : > { %2321 = vmatprep.subr.bf16.mxu0 %v2790_v11  ;;  %2572 = vmatprep.subr.bf16.mxu1 %v2790_v11 }
 0x10c   : > { %2322 = vmatpush3.bf16.msra.mxu0 %v2791_v14  ;;  %2580 = vmatpush3.bf16.msra.mxu1 %v2791_v14 }
 0x10d   : > { %2323 = vmatprep.subr.bf16.mxu0 %v2792_v15  ;;  %2573 = vmatprep.subr.bf16.mxu1 %v2792_v15  ;;  %v438_v15 = vld [vmem:[#allocation2 + $0x18] sm:$0xff] }
 0x110   : > { %2324 = vmatpush3.bf16.msra.mxu0 %v2793_v16  ;;  %2581 = vmatpush3.bf16.msra.mxu1 %v2793_v16 }
 0x111   : > { %2325 = vmatprep.subr.bf16.mxu0 %v2794_v17  ;;  %2574 = vmatprep.subr.bf16.mxu1 %v2794_v17  ;;  %v454_v17 = vld [vmem:[#allocation2 + $0x98] sm:$0xff] }
 0x114   : > { %2326 = vmatpush3.bf16.msra.mxu0 %v2795_v18  ;;  %2582 = vmatpush3.bf16.msra.mxu1 %v2795_v18 }
 0x117   : > { %820 = vmatmul.mubr.bf16.vlgmr.msra.gmra.mrb[0].mxu0 %v2796_v19  ;;  %884 = vmatmul.mubr.bf16.vlgmr.msra.gmra.mrb[0].mxu1 %v2799_v20 }
 0x118   : > { %827 = vmatprep.mubr.bf16.mxu0 %v2802_v21  ;;  %891 = vmatprep.mubr.bf16.mxu1 %v2804_v22 }
 0x11f   : > { %828 = vmatmul.mubr.bf16.gmra.mrb[4].mxu0 %v2806_v23  ;;  %892 = vmatmul.mubr.bf16.gmra.mrb[4].mxu1 %v2807_v24 }
 0x120   : > { %835 = vmatprep.mubr.bf16.mxu0 %v2808_v25  ;;  %899 = vmatprep.mubr.bf16.mxu1 %v2810_v26 }
 0x127   : > { %836 = vmatmul.mubr.bf16.gmra.mrb[8].mxu0 %v2812_v27  ;;  %900 = vmatmul.mubr.bf16.gmra.mrb[8].mxu1 %v2813_v28  ;;  %v439_v27 = vld [vmem:[#allocation2 + $0x20] sm:$0xff] }
 0x128   : > { %843 = vmatprep.mubr.bf16.mxu0 %v2814_v29  ;;  %907 = vmatprep.mubr.bf16.mxu1 %v2816_v30  ;;  %v455_v29 = vld [vmem:[#allocation2 + $0xa0] sm:$0xff] }
 0x12f   : > { %844 = vmatmul.mubr.bf16.gmra.mrb[12].mxu0 %v2818_v31  ;;  %908 = vmatmul.mubr.bf16.gmra.mrb[12].mxu1 %v2819_v32 }
 0x130   : > { %851 = vmatprep.mubr.bf16.mxu0 %v2820_v33  ;;  %915 = vmatprep.mubr.bf16.mxu1 %v2822_v34 }
 0x137   : > { %852 = vmatmul.mubr.bf16.gmra.mrb[16].mxu0 %v2824_v35  ;;  %916 = vmatmul.mubr.bf16.gmra.mrb[16].mxu1 %v2825_v36  ;;  %v440_v35 = vld [vmem:[#allocation2 + $0x28] sm:$0xff] }
 0x138   : > { %859 = vmatprep.mubr.bf16.mxu0 %v2826_v37  ;;  %923 = vmatprep.mubr.bf16.mxu1 %v2828_v38  ;;  %v456_v37 = vld [vmem:[#allocation2 + $0xa8] sm:$0xff] }
 0x13f   : > { %860 = vmatmul.mubr.bf16.gmra.mrb[20].mxu0 %v2830_v39  ;;  %924 = vmatmul.mubr.bf16.gmra.mrb[20].mxu1 %v2831_v40 }
 0x140   : > { %867 = vmatprep.mubr.bf16.mxu0 %v2832_v41  ;;  %931 = vmatprep.mubr.bf16.mxu1 %v2834_v42 }
 0x147   : > { %868 = vmatmul.mubr.bf16.gmra.mrb[24].mxu0 %v2836_v43  ;;  %932 = vmatmul.mubr.bf16.gmra.mrb[24].mxu1 %v2837_v44 }
 0x148   : > { %875 = vmatprep.mubr.bf16.mxu0 %v2838_v45  ;;  %939 = vmatprep.mubr.bf16.mxu1 %v2840_v46 }
 0x14f   : > { %876 = vmatmul.mubr.bf16.gmra.mrb[28].mxu0 %v2842_v47  ;;  %940 = vmatmul.mubr.bf16.gmra.mrb[28].mxu1 %v2843_v48  ;;  %v441_v47 = vld [vmem:[#allocation2 + $0x30] sm:$0xff] }
 0x1ea   : > { %v2327_v49 = vpop.f32.mrb[0].mxu0  ;;  %v2375_v50 = vpop.f32.mrb[0].mxu1 }
 0x1eb   : > { %v2328_v52 = vpop.f32.mrb[1].mxu0  ;;  %v2376_v54 = vpop.f32.mrb[1].mxu1 }
 0x1ec   : > { %v2329_v55 = vadd.f32 %v2328_v52, %v2327_v49  ;;  %v2377_v56 = vadd.f32 %v2376_v54, %v2375_v50  ;;  %v2330_v57 = vpop.f32.mrb[2].mxu0  ;;  %v2378_v58 = vpop.f32.mrb[2].mxu1  ;;  %v457_v49 = vld [vmem:[#allocation2 + $0xb0] sm:$0xff] }
 0x1ed   : > { %v2331_v60 = vpop.f32.mrb[3].mxu0  ;;  %v2379_v62 = vpop.f32.mrb[3].mxu1 }
 0x1ee   : > { %v948_v63 = vadd.f32 %v2329_v55, %v435_v51  ;;  %v964_v0 = vadd.f32 %v2377_v56, %v451_v53  ;;  %v2332_v1 = vadd.f32 %v2331_v60, %v2330_v57  ;;  %v2380_v2 = vadd.f32 %v2379_v62, %v2378_v58  ;;  %v442_v55 = vld [vmem:[#allocation2 + $0x38] sm:$0xff] }
 0x1ef   : > { %v458_v57 = vld [vmem:[#allocation2 + $0xb8] sm:$0xff] }
 0x1f0   : > { %980 = vst [vmem:[#allocation2] sm:$0xff] %v948_v63  ;;  %996 = vst [vmem:[#allocation2 + $0x80] sm:$0xff] %v964_v0  ;;  %v949_v3 = vadd.f32 %v2332_v1, %v436_v59  ;;  %v965_v4 = vadd.f32 %v2380_v2, %v452_v61 }
 0x1f2   : > { %981 = vst [vmem:[#allocation2 + $0x8] sm:$0xff] %v949_v3  ;;  %997 = vst [vmem:[#allocation2 + $0x88] sm:$0xff] %v965_v4  ;;  %v2333_v5 = vpop.f32.mrb[4].mxu0  ;;  %v2381_v6 = vpop.f32.mrb[4].mxu1  ;;  %v443_v3 = vld [vmem:[#allocation2 + $0x40] sm:$0xff] }
 0x1f3   : > { %v2334_v8 = vpop.f32.mrb[5].mxu0  ;;  %v2382_v10 = vpop.f32.mrb[5].mxu1 }
 0x1f4   : > { %v2335_v11 = vadd.f32 %v2334_v8, %v2333_v5  ;;  %v2383_v12 = vadd.f32 %v2382_v10, %v2381_v6  ;;  %v2336_v13 = vpop.f32.mrb[6].mxu0  ;;  %v2384_v14 = vpop.f32.mrb[6].mxu1  ;;  %v459_v5 = vld [vmem:[#allocation2 + $0xc0] sm:$0xff] }
 0x1f5   : > { %v2337_v16 = vpop.f32.mrb[7].mxu0  ;;  %v2385_v18 = vpop.f32.mrb[7].mxu1 }
 0x1f6   : > { %v950_v19 = vadd.f32 %v2335_v11, %v437_v7  ;;  %v966_v20 = vadd.f32 %v2383_v12, %v453_v9  ;;  %v2338_v21 = vadd.f32 %v2337_v16, %v2336_v13  ;;  %v2386_v22 = vadd.f32 %v2385_v18, %v2384_v14  ;;  %v444_v11 = vld [vmem:[#allocation2 + $0x48] sm:$0xff] }
 0x1f7   : > { %v460_v13 = vld [vmem:[#allocation2 + $0xc8] sm:$0xff] }
 0x1f8   : > { %982 = vst [vmem:[#allocation2 + $0x10] sm:$0xff] %v950_v19  ;;  %998 = vst [vmem:[#allocation2 + $0x90] sm:$0xff] %v966_v20  ;;  %v951_v23 = vadd.f32 %v2338_v21, %v438_v15  ;;  %v967_v24 = vadd.f32 %v2386_v22, %v454_v17 }
 0x1fa   : > { %983 = vst [vmem:[#allocation2 + $0x18] sm:$0xff] %v951_v23  ;;  %999 = vst [vmem:[#allocation2 + $0x98] sm:$0xff] %v967_v24  ;;  %v2339_v25 = vpop.f32.mrb[8].mxu0  ;;  %v2387_v26 = vpop.f32.mrb[8].mxu1  ;;  %v445_v23 = vld [vmem:[#allocation2 + $0x50] sm:$0xff] }
 0x1fb   : > { %v2340_v28 = vpop.f32.mrb[9].mxu0  ;;  %v2388_v30 = vpop.f32.mrb[9].mxu1 }
 0x1fc   : > { %v2341_v31 = vadd.f32 %v2340_v28, %v2339_v25  ;;  %v2389_v32 = vadd.f32 %v2388_v30, %v2387_v26  ;;  %v2342_v33 = vpop.f32.mrb[10].mxu0  ;;  %v2390_v34 = vpop.f32.mrb[10].mxu1  ;;  %v461_v25 = vld [vmem:[#allocation2 + $0xd0] sm:$0xff] }
 0x1fd   : > { %v2343_v36 = vpop.f32.mrb[11].mxu0  ;;  %v2391_v38 = vpop.f32.mrb[11].mxu1 }
 0x1fe   : > { %v952_v39 = vadd.f32 %v2341_v31, %v439_v27  ;;  %v968_v40 = vadd.f32 %v2389_v32, %v455_v29  ;;  %v2344_v41 = vadd.f32 %v2343_v36, %v2342_v33  ;;  %v2392_v42 = vadd.f32 %v2391_v38, %v2390_v34  ;;  %v446_v31 = vld [vmem:[#allocation2 + $0x58] sm:$0xff] }
 0x1ff   : > { %v462_v33 = vld [vmem:[#allocation2 + $0xd8] sm:$0xff] }
 0x200   : > { %984 = vst [vmem:[#allocation2 + $0x20] sm:$0xff] %v952_v39  ;;  %1000 = vst [vmem:[#allocation2 + $0xa0] sm:$0xff] %v968_v40  ;;  %v953_v43 = vadd.f32 %v2344_v41, %v440_v35  ;;  %v969_v44 = vadd.f32 %v2392_v42, %v456_v37 }
 0x202   : > { %985 = vst [vmem:[#allocation2 + $0x28] sm:$0xff] %v953_v43  ;;  %1001 = vst [vmem:[#allocation2 + $0xa8] sm:$0xff] %v969_v44  ;;  %v2345_v45 = vpop.f32.mrb[12].mxu0  ;;  %v2393_v46 = vpop.f32.mrb[12].mxu1  ;;  %v447_v43 = vld [vmem:[#allocation2 + $0x60] sm:$0xff] }
 0x203   : > { %v2346_v48 = vpop.f32.mrb[13].mxu0  ;;  %v2394_v50 = vpop.f32.mrb[13].mxu1 }
 0x204   : > { %v2347_v51 = vadd.f32 %v2346_v48, %v2345_v45  ;;  %v2395_v52 = vadd.f32 %v2394_v50, %v2393_v46  ;;  %v2348_v53 = vpop.f32.mrb[14].mxu0  ;;  %v2396_v54 = vpop.f32.mrb[14].mxu1  ;;  %v463_v45 = vld [vmem:[#allocation2 + $0xe0] sm:$0xff] }
 0x205   : > { %v2349_v56 = vpop.f32.mrb[15].mxu0  ;;  %v2397_v58 = vpop.f32.mrb[15].mxu1 }
 0x206   : > { %v954_v59 = vadd.f32 %v2347_v51, %v441_v47  ;;  %v970_v60 = vadd.f32 %v2395_v52, %v457_v49  ;;  %v2350_v61 = vadd.f32 %v2349_v56, %v2348_v53  ;;  %v2398_v62 = vadd.f32 %v2397_v58, %v2396_v54  ;;  %v448_v51 = vld [vmem:[#allocation2 + $0x68] sm:$0xff] }
 0x207   : > { %v464_v53 = vld [vmem:[#allocation2 + $0xe8] sm:$0xff] }
 0x208   : > { %986 = vst [vmem:[#allocation2 + $0x30] sm:$0xff] %v954_v59  ;;  %1002 = vst [vmem:[#allocation2 + $0xb0] sm:$0xff] %v970_v60  ;;  %v955_v63 = vadd.f32 %v2350_v61, %v442_v55  ;;  %v971_v0 = vadd.f32 %v2398_v62, %v458_v57 }
 0x20a   : > { %987 = vst [vmem:[#allocation2 + $0x38] sm:$0xff] %v955_v63  ;;  %1003 = vst [vmem:[#allocation2 + $0xb8] sm:$0xff] %v971_v0  ;;  %v2351_v1 = vpop.f32.mrb[16].mxu0  ;;  %v2399_v2 = vpop.f32.mrb[16].mxu1  ;;  %v449_v63 = vld [vmem:[#allocation2 + $0x70] sm:$0xff] }
 0x20b   : > { %v2352_v4 = vpop.f32.mrb[17].mxu0  ;;  %v2400_v6 = vpop.f32.mrb[17].mxu1 }
 0x20c   : > { %v2353_v7 = vadd.f32 %v2352_v4, %v2351_v1  ;;  %v2401_v8 = vadd.f32 %v2400_v6, %v2399_v2  ;;  %v2354_v9 = vpop.f32.mrb[18].mxu0  ;;  %v2402_v10 = vpop.f32.mrb[18].mxu1  ;;  %v465_v1 = vld [vmem:[#allocation2 + $0xf0] sm:$0xff] }
 0x20d   : > { %v2355_v12 = vpop.f32.mrb[19].mxu0  ;;  %v2403_v14 = vpop.f32.mrb[19].mxu1 }
 0x20e   : > { %v956_v15 = vadd.f32 %v2353_v7, %v443_v3  ;;  %v972_v16 = vadd.f32 %v2401_v8, %v459_v5  ;;  %v2356_v17 = vadd.f32 %v2355_v12, %v2354_v9  ;;  %v2404_v18 = vadd.f32 %v2403_v14, %v2402_v10  ;;  %v450_v7 = vld [vmem:[#allocation2 + $0x78] sm:$0xff] }
 0x20f   : > { %v466_v9 = vld [vmem:[#allocation2 + $0xf8] sm:$0xff] }
 0x210   : > { %988 = vst [vmem:[#allocation2 + $0x40] sm:$0xff] %v956_v15  ;;  %1004 = vst [vmem:[#allocation2 + $0xc0] sm:$0xff] %v972_v16  ;;  %v957_v19 = vadd.f32 %v2356_v17, %v444_v11  ;;  %v973_v20 = vadd.f32 %v2404_v18, %v460_v13  ;;  %v2844_v17 = vld [vmem:[#allocation11] sm:$0xff] (!%p2109_p5)  }
 0x211   : > { %v2845_v18 = vld [vmem:[#allocation9] sm:$0xff] (!%p2109_p5)   ;;  %2471 = vmatprep.subr.bf16.mxu1 (!%p2109_p5), %v2844_v17 }
 0x212   : > { %989 = vst [vmem:[#allocation2 + $0x48] sm:$0xff] %v957_v19  ;;  %1005 = vst [vmem:[#allocation2 + $0xc8] sm:$0xff] %v973_v20  ;;  %v2357_v21 = vpop.f32.mrb[20].mxu0  ;;  %v2405_v22 = vpop.f32.mrb[20].mxu1  ;;  %v2846_v19 = vld [vmem:[#allocation11 + $0x8] sm:$0xff] (!%p2109_p5)   ;;  %2519 = vmatprep.subr.bf16.mxu0 (!%p2109_p5), %v2845_v18  ;;  %2472 = vmatpush3.bf16.msra.mxu1 (!%p2109_p5), %v2844_v17  ;;  %v2871_v17 = vld [vmem:[%s3616_s25 + $0x58] sm:$0xff] (!%p2109_p5)  }
 0x213   : > { %v2358_v24 = vpop.f32.mrb[21].mxu0  ;;  %v2406_v26 = vpop.f32.mrb[21].mxu1  ;;  %v2847_v20 = vld [vmem:[#allocation9 + $0x8] sm:$0xff] (!%p2109_p5)   ;;  %2520 = vmatpush3.bf16.msra.mxu0 (!%p2109_p5), %v2845_v18  ;;  %2473 = vmatprep.subr.bf16.mxu1 (!%p2109_p5), %v2846_v19 }
 0x214   : > { %v2359_v27 = vadd.f32 %v2358_v24, %v2357_v21  ;;  %v2407_v28 = vadd.f32 %v2406_v26, %v2405_v22  ;;  %v2360_v29 = vpop.f32.mrb[22].mxu0  ;;  %v2408_v30 = vpop.f32.mrb[22].mxu1  ;;  %v2848_v21 = vld [vmem:[#allocation11 + $0x10] sm:$0xff] (!%p2109_p5)   ;;  %2521 = vmatprep.subr.bf16.mxu0 (!%p2109_p5), %v2847_v20  ;;  %v2851_v24 = vld [vmem:[#allocation9 + $0x18] sm:$0xff] (!%p2109_p5)   ;;  %v2853_v26 = vld [vmem:[#allocation9 + $0x20] sm:$0xff] (!%p2109_p5)  }
 0x215   : > { %v2361_v32 = vpop.f32.mrb[23].mxu0  ;;  %v2409_v34 = vpop.f32.mrb[23].mxu1  ;;  %v2849_v22 = vld [vmem:[#allocation9 + $0x10] sm:$0xff] (!%p2109_p5)  }
 0x216   : > { %v958_v35 = vadd.f32 %v2359_v27, %v445_v23  ;;  %v974_v36 = vadd.f32 %v2407_v28, %v461_v25  ;;  %v2362_v37 = vadd.f32 %v2361_v32, %v2360_v29  ;;  %v2410_v38 = vadd.f32 %v2409_v34, %v2408_v30  ;;  %2474 = vmatpush3.bf16.msra.mxu1 (!%p2109_p5), %v2846_v19  ;;  %v2850_v23 = vld [vmem:[#allocation11 + $0x18] sm:$0xff] (!%p2109_p5)   ;;  %v2852_v25 = vld [vmem:[#allocation11 + $0x20] sm:$0xff] (!%p2109_p5)   ;;  %v2854_v27 = vld [vmem:[#allocation11 + $0x28] sm:$0xff] (!%p2109_p5)  }
 0x217   : > { %2522 = vmatpush3.bf16.msra.mxu0 (!%p2109_p5), %v2847_v20  ;;  %2475 = vmatprep.subr.bf16.mxu1 (!%p2109_p5), %v2848_v21  ;;  %v2855_v28 = vld [vmem:[#allocation9 + $0x28] sm:$0xff] (!%p2109_p5)   ;;  %v2860_v29 = vld [vmem:[%s3616_s25] sm:$0xff] (!%p2109_p5)   ;;  %v2857_v34 = vld [vmem:[#allocation9 + $0x30] sm:$0xff] (!%p2109_p5)  }
 0x218   : > { %990 = vst [vmem:[#allocation2 + $0x50] sm:$0xff] %v958_v35  ;;  %1006 = vst [vmem:[#allocation2 + $0xd0] sm:$0xff] %v974_v36  ;;  %v959_v39 = vadd.f32 %v2362_v37, %v446_v31  ;;  %v975_v40 = vadd.f32 %v2410_v38, %v462_v33  ;;  %2523 = vmatprep.subr.bf16.mxu0 (!%p2109_p5), %v2849_v22  ;;  %v1016_v30 = vld [vmem:[#allocation2] sm:$0xff] (!%p2109_p5)  ;;  %v1017_v31 = vld [vmem:[#allocation2 + $0x8] sm:$0xff] (!%p2109_p5)  ;;  %2487 = vmatprep.mubr.bf16.mxu1 (!%p2109_p5), %v2860_v29 }
 0x219   : > { %v1048_v32 = vpack.c.bf16 (!%p2109_p5), %v1017_v31, %v1016_v30  ;;  %v2856_v33 = vld [vmem:[#allocation11 + $0x30] sm:$0xff] (!%p2109_p5)   ;;  %v2858_v35 = vld [vmem:[#allocation11 + $0x38] sm:$0xff] (!%p2109_p5)   ;;  %v2872_v19 = vld [vmem:[%s3616_s25 + $0x60] sm:$0xff] (!%p2109_p5)  }
 0x21a   : > { %991 = vst [vmem:[#allocation2 + $0x58] sm:$0xff] %v959_v39  ;;  %1007 = vst [vmem:[#allocation2 + $0xd8] sm:$0xff] %v975_v40  ;;  %v2363_v41 = vpop.f32.mrb[24].mxu0  ;;  %v2411_v42 = vpop.f32.mrb[24].mxu1  ;;  %2476 = vmatpush3.bf16.msra.mxu1 (!%p2109_p5), %v2848_v21  ;;  %v2859_v36 = vld [vmem:[#allocation9 + $0x38] sm:$0xff] (!%p2109_p5)   ;;  %v1018_v37 = vld [vmem:[#allocation2 + $0x10] sm:$0xff] (!%p2109_p5) }
 0x21b   : > { %v2364_v44 = vpop.f32.mrb[25].mxu0  ;;  %v2412_v46 = vpop.f32.mrb[25].mxu1  ;;  %2524 = vmatpush3.bf16.msra.mxu0 (!%p2109_p5), %v2849_v22  ;;  %2477 = vmatprep.subr.bf16.mxu1 (!%p2109_p5), %v2850_v23  ;;  %v1019_v38 = vld [vmem:[#allocation2 + $0x18] sm:$0xff] (!%p2109_p5)  ;;  %v1020_v39 = vld [vmem:[#allocation2 + $0x20] sm:$0xff] (!%p2109_p5)  ;;  %v1021_v40 = vld [vmem:[#allocation2 + $0x28] sm:$0xff] (!%p2109_p5) }
 0x21c   : > { %v2365_v47 = vadd.f32 %v2364_v44, %v2363_v41  ;;  %v2413_v48 = vadd.f32 %v2412_v46, %v2411_v42  ;;  %v2366_v49 = vpop.f32.mrb[26].mxu0  ;;  %v2414_v50 = vpop.f32.mrb[26].mxu1  ;;  %2525 = vmatprep.subr.bf16.mxu0 (!%p2109_p5), %v2851_v24  ;;  %2535 = vmatprep.mubr.bf16.mxu0 (!%p2109_p5), %v1048_v32  ;;  %v2861_v41 = vld [vmem:[%s3616_s25 + $0x8] sm:$0xff] (!%p2109_p5)   ;;  %v1049_v42 = vpack.c.bf16 (!%p2109_p5), %v1019_v38, %v1018_v37  ;;  %v1023_v46 = vld [vmem:[#allocation2 + $0x38] sm:$0xff] (!%p2109_p5) }
 0x21d   : > { %v2367_v52 = vpop.f32.mrb[27].mxu0  ;;  %v2415_v54 = vpop.f32.mrb[27].mxu1  ;;  %v1050_v44 = vpack.c.bf16 (!%p2109_p5), %v1021_v40, %v1020_v39  ;;  %v2875_v31 = vld [vmem:[%s3616_s25 + $0x78] sm:$0xff] (!%p2109_p5)  }
 0x21e   : > { %v960_v55 = vadd.f32 %v2365_v47, %v447_v43  ;;  %v976_v56 = vadd.f32 %v2413_v48, %v463_v45  ;;  %v2368_v57 = vadd.f32 %v2367_v52, %v2366_v49  ;;  %v2416_v58 = vadd.f32 %v2415_v54, %v2414_v50  ;;  %2478 = vmatpush3.bf16.msra.mxu1 (!%p2109_p5), %v2850_v23  ;;  %v2862_v43 = vld [vmem:[%s3616_s25 + $0x10] sm:$0xff] (!%p2109_p5)   ;;  %v1024_v47 = vld [vmem:[#allocation2 + $0x40] sm:$0xff] (!%p2109_p5)  ;;  %v1025_v48 = vld [vmem:[#allocation2 + $0x48] sm:$0xff] (!%p2109_p5) }
 0x21f   : > { %2526 = vmatpush3.bf16.msra.mxu0 (!%p2109_p5), %v2851_v24  ;;  %2479 = vmatprep.subr.bf16.mxu1 (!%p2109_p5), %v2852_v25  ;;  %v1022_v45 = vld [vmem:[#allocation2 + $0x30] sm:$0xff] (!%p2109_p5)  ;;  %v2863_v49 = vld [vmem:[%s3616_s25 + $0x18] sm:$0xff] (!%p2109_p5)   ;;  %v1052_v52 = vpack.c.bf16 (!%p2109_p5), %v1025_v48, %v1024_v47 }
 0x220   : > { %992 = vst [vmem:[#allocation2 + $0x60] sm:$0xff] %v960_v55  ;;  %1008 = vst [vmem:[#allocation2 + $0xe0] sm:$0xff] %v976_v56  ;;  %v961_v59 = vadd.f32 %v2368_v57, %v448_v51  ;;  %v977_v60 = vadd.f32 %v2416_v58, %v464_v53  ;;  %2527 = vmatprep.subr.bf16.mxu0 (!%p2109_p5), %v2853_v26  ;;  %v1051_v50 = vpack.c.bf16 (!%p2109_p5), %v1023_v46, %v1022_v45  ;;  %v2864_v51 = vld [vmem:[%s3616_s25 + $0x20] sm:$0xff] (!%p2109_p5)   ;;  %v1026_v53 = vld [vmem:[#allocation2 + $0x50] sm:$0xff] (!%p2109_p5) }
 0x221   : > { %v1027_v54 = vld [vmem:[#allocation2 + $0x58] sm:$0xff] (!%p2109_p5)  ;;  %v2865_v57 = vld [vmem:[%s3616_s25 + $0x28] sm:$0xff] (!%p2109_p5)   ;;  %v1042_v21 = vld [vmem:[#allocation2 + $0xd0] sm:$0xff] (!%p2109_p5) }
 0x222   : > { %993 = vst [vmem:[#allocation2 + $0x68] sm:$0xff] %v961_v59  ;;  %1009 = vst [vmem:[#allocation2 + $0xe8] sm:$0xff] %v977_v60  ;;  %v2369_v61 = vpop.f32.mrb[28].mxu0  ;;  %v2417_v62 = vpop.f32.mrb[28].mxu1  ;;  %2480 = vmatpush3.bf16.msra.mxu1 (!%p2109_p5), %v2852_v25  ;;  %v1053_v58 = vpack.c.bf16 (!%p2109_p5), %v1027_v54, %v1026_v53  ;;  %v2866_v59 = vld [vmem:[%s3616_s25 + $0x30] sm:$0xff] (!%p2109_p5)   ;;  %v1043_v22 = vld [vmem:[#allocation2 + $0xd8] sm:$0xff] (!%p2109_p5) }
 0x223   : > { %v2370_v0 = vpop.f32.mrb[29].mxu0  ;;  %v2418_v2 = vpop.f32.mrb[29].mxu1  ;;  %2528 = vmatpush3.bf16.msra.mxu0 (!%p2109_p5), %v2853_v26  ;;  %2481 = vmatprep.subr.bf16.mxu1 (!%p2109_p5), %v2854_v27  ;;  %v2873_v25 = vld [vmem:[%s3616_s25 + $0x68] sm:$0xff] (!%p2109_p5)   ;;  %v1061_v26 = vpack.c.bf16 (!%p2109_p5), %v1043_v22, %v1042_v21 }
 0x224   : > { %v2371_v3 = vadd.f32 %v2370_v0, %v2369_v61  ;;  %v2419_v4 = vadd.f32 %v2418_v2, %v2417_v62  ;;  %v2372_v5 = vpop.f32.mrb[30].mxu0  ;;  %v2420_v6 = vpop.f32.mrb[30].mxu1  ;;  %1015 = sbr.rel (%p2109_p5) target bundleno = 842 (0x34a), region = 72  ;;  %2529 = vmatprep.subr.bf16.mxu0 (!%p2109_p5), %v2855_v28  ;;  %v1033_v0 = vld [vmem:[#allocation2 + $0x88] sm:$0xff] (!%p2109_p5) }
 0x225   : > { %v2373_v8 = vpop.f32.mrb[31].mxu0  ;;  %v2421_v10 = vpop.f32.mrb[31].mxu1 }
 0x226   : > { %v962_v11 = vadd.f32 %v2371_v3, %v449_v63  ;;  %v978_v12 = vadd.f32 %v2419_v4, %v465_v1  ;;  %v2374_v13 = vadd.f32 %v2373_v8, %v2372_v5  ;;  %v2422_v14 = vadd.f32 %v2421_v10, %v2420_v6  ;;  %2482 = vmatpush3.bf16.msra.mxu1 (!%p2109_p5), %v2854_v27  ;;  %v1032_v63 = vld [vmem:[#allocation2 + $0x80] sm:$0xff] (!%p2109_p5)  ;;  %v2867_v1 = vld [vmem:[%s3616_s25 + $0x38] sm:$0xff] (!%p2109_p5)   ;;  %v1034_v5 = vld [vmem:[#allocation2 + $0x90] sm:$0xff] (!%p2109_p5) }
 0x227   : > { %2530 = vmatpush3.bf16.msra.mxu0 (!%p2109_p5), %v2855_v28  ;;  %2483 = vmatprep.subr.bf16.mxu1 (!%p2109_p5), %v2856_v33  ;;  %v1028_v55 = vld [vmem:[#allocation2 + $0x60] sm:$0xff] (!%p2109_p5)  ;;  %v1056_v4 = vpack.c.bf16 (!%p2109_p5), %v1033_v0, %v1032_v63  ;;  %v1035_v6 = vld [vmem:[#allocation2 + $0x98] sm:$0xff] (!%p2109_p5)  ;;  %v1037_v8 = vld [vmem:[#allocation2 + $0xa8] sm:$0xff] (!%p2109_p5) }
 0x228   : > { %994 = vst [vmem:[#allocation2 + $0x70] sm:$0xff] %v962_v11  ;;  %1010 = vst [vmem:[#allocation2 + $0xf0] sm:$0xff] %v978_v12  ;;  %v963_v15 = vadd.f32 %v2374_v13, %v450_v7  ;;  %v979_v16 = vadd.f32 %v2422_v14, %v466_v9  ;;  %2531 = vmatprep.subr.bf16.mxu0 (!%p2109_p5), %v2857_v34  ;;  %v2868_v3 = vld [vmem:[%s3616_s25 + $0x40] sm:$0xff] (!%p2109_p5)   ;;  %v2869_v9 = vld [vmem:[%s3616_s25 + $0x48] sm:$0xff] (!%p2109_p5)   ;;  %v1057_v10 = vpack.c.bf16 (!%p2109_p5), %v1035_v6, %v1034_v5 }
 0x229   : > { %v1029_v56 = vld [vmem:[#allocation2 + $0x68] sm:$0xff] (!%p2109_p5)  ;;  %v1036_v7 = vld [vmem:[#allocation2 + $0xa0] sm:$0xff] (!%p2109_p5)  ;;  %v2870_v11 = vld [vmem:[%s3616_s25 + $0x50] sm:$0xff] (!%p2109_p5)  }
 0x22a   : > { %995 = vst [vmem:[#allocation2 + $0x78] sm:$0xff] %v963_v15  ;;  %1011 = vst [vmem:[#allocation2 + $0xf8] sm:$0xff] %v979_v16  ;;  %2484 = vmatpush3.bf16.msra.mxu1 (!%p2109_p5), %v2856_v33  ;;  %v1054_v60 = vpack.c.bf16 (!%p2109_p5), %v1029_v56, %v1028_v55  ;;  %v1058_v12 = vpack.c.bf16 (!%p2109_p5), %v1037_v8, %v1036_v7  ;;  %v1038_v13 = vld [vmem:[#allocation2 + $0xb0] sm:$0xff] (!%p2109_p5)  ;;  %v1039_v14 = vld [vmem:[#allocation2 + $0xb8] sm:$0xff] (!%p2109_p5) }
 0x22b   : > { %2532 = vmatpush3.bf16.msra.mxu0 %v2857_v34  ;;  %2485 = vmatprep.subr.bf16.mxu1 %v2858_v35  ;;  %v1040_v15 = vld [vmem:[#allocation2 + $0xc0] sm:$0xff]  ;;  %v1041_v16 = vld [vmem:[#allocation2 + $0xc8] sm:$0xff]  ;;  %v1059_v18 = vpack.c.bf16 %v1039_v14, %v1038_v13  ;;  %v2874_v27 = vld [vmem:[%s3616_s25 + $0x70] sm:$0xff]  }
 0x22c   : > { %2533 = vmatprep.subr.bf16.mxu0 %v2859_v36  ;;  %v1060_v20 = vpack.c.bf16 %v1041_v16, %v1040_v15  ;;  %v1044_v23 = vld [vmem:[#allocation2 + $0xe0] sm:$0xff]  ;;  %v1045_v24 = vld [vmem:[#allocation2 + $0xe8] sm:$0xff] }
 0x22d   : > { %v1062_v28 = vpack.c.bf16 %v1045_v24, %v1044_v23 }
 0x22e   : > { %2486 = vmatpush3.bf16.msra.mxu1 %v2858_v35  ;;  %v3697_v35 = vld [vmem:[%s3911_s0] ss:$0 sm:$0xff] }
 0x22f   : > { %2534 = vmatpush3.bf16.msra.mxu0 %v2859_v36  ;;  %v1030_v61 = vld [vmem:[#allocation2 + $0x70] sm:$0xff] }
 0x230   : > { %v1046_v29 = vld [vmem:[#allocation2 + $0xf0] sm:$0xff] }
 0x231   : > { %2488 = vmatmul.mubr.bf16.vlgmr.msra.gmra.mrb[0].mxu1 %v2861_v41  ;;  %v1031_v62 = vld [vmem:[#allocation2 + $0x78] sm:$0xff] }
 0x232   : > { %2536 = vmatmul.mubr.bf16.vlgmr.msra.gmra.mrb[0].mxu0 %v1049_v42  ;;  %2491 = vmatprep.mubr.bf16.mxu1 %v2862_v43  ;;  %v1055_v2 = vpack.c.bf16 %v1031_v62, %v1030_v61  ;;  %v1047_v30 = vld [vmem:[#allocation2 + $0xf8] sm:$0xff] }
 0x233   : > { %2539 = vmatprep.mubr.bf16.mxu0 %v1050_v44  ;;  %v1063_v32 = vpack.c.bf16 %v1047_v30, %v1046_v29 }
 0x239   : > { %2492 = vmatmul.mubr.bf16.gmra.mrb[4].mxu1 %v2863_v49 }
 0x23a   : > { %2540 = vmatmul.mubr.bf16.gmra.mrb[4].mxu0 %v1051_v50  ;;  %2495 = vmatprep.mubr.bf16.mxu1 %v2864_v51 }
 0x23b   : > { %2543 = vmatprep.mubr.bf16.mxu0 %v1052_v52 }
 0x241   : > { %2496 = vmatmul.mubr.bf16.gmra.mrb[8].mxu1 %v2865_v57 }
 0x242   : > { %2544 = vmatmul.mubr.bf16.gmra.mrb[8].mxu0 %v1053_v58  ;;  %2499 = vmatprep.mubr.bf16.mxu1 %v2866_v59 }
 0x243   : > { %2547 = vmatprep.mubr.bf16.mxu0 %v1054_v60 }
 0x249   : > { %2500 = vmatmul.mubr.bf16.gmra.mrb[12].mxu1 %v2867_v1 }
 0x24a   : > { %2548 = vmatmul.mubr.bf16.gmra.mrb[12].mxu0 %v1055_v2  ;;  %2503 = vmatprep.mubr.bf16.mxu1 %v2868_v3 }
 0x24b   : > { %2551 = vmatprep.mubr.bf16.mxu0 %v1056_v4 }
 0x251   : > { %2504 = vmatmul.mubr.bf16.gmra.mrb[16].mxu1 %v2869_v9 }
 0x252   : > { %2552 = vmatmul.mubr.bf16.gmra.mrb[16].mxu0 %v1057_v10  ;;  %2507 = vmatprep.mubr.bf16.mxu1 %v2870_v11 }
 0x253   : > { %2555 = vmatprep.mubr.bf16.mxu0 %v1058_v12 }
 0x259   : > { %2508 = vmatmul.mubr.bf16.gmra.mrb[20].mxu1 %v2871_v17 }
 0x25a   : > { %2556 = vmatmul.mubr.bf16.gmra.mrb[20].mxu0 %v1059_v18  ;;  %2511 = vmatprep.mubr.bf16.mxu1 %v2872_v19 }
 0x25b   : > { %2559 = vmatprep.mubr.bf16.mxu0 %v1060_v20 }
 0x261   : > { %2512 = vmatmul.mubr.bf16.gmra.mrb[24].mxu1 %v2873_v25 }
 0x262   : > { %2560 = vmatmul.mubr.bf16.gmra.mrb[24].mxu0 %v1061_v26  ;;  %2515 = vmatprep.mubr.bf16.mxu1 %v2874_v27 }
 0x263   : > { %2563 = vmatprep.mubr.bf16.mxu0 %v1062_v28 }
 0x269   : > { %2516 = vmatmul.mubr.bf16.gmra.mrb[28].mxu1 %v2875_v31 }
 0x26a   : > { %2564 = vmatmul.mubr.bf16.gmra.mrb[28].mxu0 %v1063_v32 }
 0x304   : > { %v2489_v33 = vpop.f32.mrb[0].mxu1 }
 0x305   : > { %v2537_v34 = vpop.f32.mrb[0].mxu0  ;;  %v1306_v36 = vpop.f32.mrb[1].mxu1 }
 0x306   : > { %v1524_v37 = vadd.f32 %v2537_v34, %v2489_v33  ;;  %v1515_v38 = vpop.f32.mrb[1].mxu0  ;;  %v2490_v39 = vpop.f32.mrb[2].mxu1 }
 0x307   : > { %v1516_v40 = vadd.f32 %v1515_v38, %v1306_v36  ;;  %v2538_v41 = vpop.f32.mrb[2].mxu0  ;;  %v1309_v42 = vpop.f32.mrb[3].mxu1 }
 0x308   : > { %v1651_v43 = vadd.f32 %v3697_v35, %v1524_v37  ;;  %v1527_v44 = vadd.f32 %v2538_v41, %v2490_v39  ;;  %v1518_v45 = vpop.f32.mrb[3].mxu0 }
 0x309   : > { %v1649_v46 = vadd.f32 %v3697_v35, %v1516_v40  ;;  %v1519_v47 = vadd.f32 %v1518_v45, %v1309_v42 }
 0x30a   : > { %v1652_v48 = vadd.f32 %v3697_v35, %v1527_v44  ;;  %v1683_v50 = vmax.f32 %v1651_v43, 0.0 }
 0x30b   : > { %v1650_v49 = vadd.f32 %v3697_v35, %v1519_v47  ;;  %v1681_v53 = vmax.f32 %v1649_v46, 0.0 }
 0x30c   : > { %v1684_v51 = vmax.f32 %v1652_v48, 0.0  ;;  %v2493_v52 = vpop.f32.mrb[4].mxu1 }
 0x30d   : > { %v1682_v54 = vmax.f32 %v1650_v49, 0.0  ;;  %v2541_v55 = vpop.f32.mrb[4].mxu0  ;;  %v1322_v56 = vpop.f32.mrb[5].mxu1 }
 0x30e   : > { %v2224_v57 = vpack.c.bf16 %v1684_v51, %v1683_v50  ;;  %v1540_v58 = vadd.f32 %v2541_v55, %v2493_v52  ;;  %v1531_v59 = vpop.f32.mrb[5].mxu0  ;;  %v2494_v60 = vpop.f32.mrb[6].mxu1 }
 0x30f   : > { %v2219_v61 = vpack.c.bf16 %v1682_v54, %v1681_v53  ;;  %v1532_v62 = vadd.f32 %v1531_v59, %v1322_v56  ;;  %v2542_v63 = vpop.f32.mrb[6].mxu0  ;;  %v1325_v0 = vpop.f32.mrb[7].mxu1 }
 0x310   : > { %2296 = vst [vmem:[%s3626_s6 + $0x8] sm:$0xff] %v2224_v57   ;;  %v1655_v1 = vadd.f32 %v3697_v35, %v1540_v58  ;;  %v1543_v2 = vadd.f32 %v2542_v63, %v2494_v60  ;;  %v1534_v3 = vpop.f32.mrb[7].mxu0 }
 0x311   : > { %2220 = vst [vmem:[%s3626_s6] sm:$0xff] %v2219_v61   ;;  %v1653_v4 = vadd.f32 %v3697_v35, %v1532_v62  ;;  %v1535_v5 = vadd.f32 %v1534_v3, %v1325_v0 }
 0x312   : > { %v1656_v6 = vadd.f32 %v3697_v35, %v1543_v2  ;;  %v1687_v8 = vmax.f32 %v1655_v1, 0.0 }
 0x313   : > { %v1654_v7 = vadd.f32 %v3697_v35, %v1535_v5  ;;  %v1685_v11 = vmax.f32 %v1653_v4, 0.0 }
 0x314   : > { %v1688_v9 = vmax.f32 %v1656_v6, 0.0  ;;  %v2497_v10 = vpop.f32.mrb[8].mxu1 }
 0x315   : > { %v1686_v12 = vmax.f32 %v1654_v7, 0.0  ;;  %v2545_v13 = vpop.f32.mrb[8].mxu0  ;;  %v1338_v14 = vpop.f32.mrb[9].mxu1 }
 0x316   : > { %v2234_v15 = vpack.c.bf16 %v1688_v9, %v1687_v8  ;;  %v1556_v16 = vadd.f32 %v2545_v13, %v2497_v10  ;;  %v1547_v17 = vpop.f32.mrb[9].mxu0  ;;  %v2498_v18 = vpop.f32.mrb[10].mxu1 }
 0x317   : > { %v2229_v19 = vpack.c.bf16 %v1686_v12, %v1685_v11  ;;  %v1548_v20 = vadd.f32 %v1547_v17, %v1338_v14  ;;  %v2546_v21 = vpop.f32.mrb[10].mxu0  ;;  %v1341_v22 = vpop.f32.mrb[11].mxu1 }
 0x318   : > { %2298 = vst [vmem:[%s3626_s6 + $0x18] sm:$0xff] %v2234_v15   ;;  %v1659_v23 = vadd.f32 %v3697_v35, %v1556_v16  ;;  %v1559_v24 = vadd.f32 %v2546_v21, %v2498_v18  ;;  %v1550_v25 = vpop.f32.mrb[11].mxu0 }
 0x319   : > { %2297 = vst [vmem:[%s3626_s6 + $0x10] sm:$0xff] %v2229_v19   ;;  %v1657_v26 = vadd.f32 %v3697_v35, %v1548_v20  ;;  %v1551_v27 = vadd.f32 %v1550_v25, %v1341_v22 }
 0x31a   : > { %v1660_v28 = vadd.f32 %v3697_v35, %v1559_v24  ;;  %v1691_v30 = vmax.f32 %v1659_v23, 0.0 }
 0x31b   : > { %v1658_v29 = vadd.f32 %v3697_v35, %v1551_v27  ;;  %v1689_v33 = vmax.f32 %v1657_v26, 0.0 }
 0x31c   : > { %v1692_v31 = vmax.f32 %v1660_v28, 0.0  ;;  %v2501_v32 = vpop.f32.mrb[12].mxu1 }
 0x31d   : > { %v1690_v34 = vmax.f32 %v1658_v29, 0.0  ;;  %v2549_v36 = vpop.f32.mrb[12].mxu0  ;;  %v1354_v37 = vpop.f32.mrb[13].mxu1 }
 0x31e   : > { %v2244_v38 = vpack.c.bf16 %v1692_v31, %v1691_v30  ;;  %v1572_v39 = vadd.f32 %v2549_v36, %v2501_v32  ;;  %v1563_v40 = vpop.f32.mrb[13].mxu0  ;;  %v2502_v41 = vpop.f32.mrb[14].mxu1 }
 0x31f   : > { %v2239_v42 = vpack.c.bf16 %v1690_v34, %v1689_v33  ;;  %v1564_v43 = vadd.f32 %v1563_v40, %v1354_v37  ;;  %v2550_v44 = vpop.f32.mrb[14].mxu0  ;;  %v1357_v45 = vpop.f32.mrb[15].mxu1 }
 0x320   : > { %2300 = vst [vmem:[%s3626_s6 + $0x28] sm:$0xff] %v2244_v38   ;;  %v1663_v46 = vadd.f32 %v3697_v35, %v1572_v39  ;;  %v1575_v47 = vadd.f32 %v2550_v44, %v2502_v41  ;;  %v1566_v48 = vpop.f32.mrb[15].mxu0 }
 0x321   : > { %2299 = vst [vmem:[%s3626_s6 + $0x20] sm:$0xff] %v2239_v42   ;;  %v1661_v49 = vadd.f32 %v3697_v35, %v1564_v43  ;;  %v1567_v50 = vadd.f32 %v1566_v48, %v1357_v45 }
 0x322   : > { %v1664_v51 = vadd.f32 %v3697_v35, %v1575_v47  ;;  %v1695_v53 = vmax.f32 %v1663_v46, 0.0 }
 0x323   : > { %v1662_v52 = vadd.f32 %v3697_v35, %v1567_v50  ;;  %v1693_v56 = vmax.f32 %v1661_v49, 0.0 }
 0x324   : > { %v1696_v54 = vmax.f32 %v1664_v51, 0.0  ;;  %v2505_v55 = vpop.f32.mrb[16].mxu1 }
 0x325   : > { %v1694_v57 = vmax.f32 %v1662_v52, 0.0  ;;  %v2553_v58 = vpop.f32.mrb[16].mxu0  ;;  %v1370_v59 = vpop.f32.mrb[17].mxu1 }
 0x326   : > { %v2254_v60 = vpack.c.bf16 %v1696_v54, %v1695_v53  ;;  %v1588_v61 = vadd.f32 %v2553_v58, %v2505_v55  ;;  %v1579_v62 = vpop.f32.mrb[17].mxu0  ;;  %v2506_v63 = vpop.f32.mrb[18].mxu1 }
 0x327   : > { %v2249_v0 = vpack.c.bf16 %v1694_v57, %v1693_v56  ;;  %v1580_v1 = vadd.f32 %v1579_v62, %v1370_v59  ;;  %v2554_v2 = vpop.f32.mrb[18].mxu0  ;;  %v1373_v3 = vpop.f32.mrb[19].mxu1 }
 0x328   : > { %2302 = vst [vmem:[%s3626_s6 + $0x38] sm:$0xff] %v2254_v60   ;;  %v1667_v4 = vadd.f32 %v3697_v35, %v1588_v61  ;;  %v1591_v5 = vadd.f32 %v2554_v2, %v2506_v63  ;;  %v1582_v6 = vpop.f32.mrb[19].mxu0 }
 0x329   : > { %2301 = vst [vmem:[%s3626_s6 + $0x30] sm:$0xff] %v2249_v0   ;;  %v1665_v7 = vadd.f32 %v3697_v35, %v1580_v1  ;;  %v1583_v8 = vadd.f32 %v1582_v6, %v1373_v3 }
 0x32a   : > { %v1668_v9 = vadd.f32 %v3697_v35, %v1591_v5  ;;  %v1699_v11 = vmax.f32 %v1667_v4, 0.0 }
 0x32b   : > { %v1666_v10 = vadd.f32 %v3697_v35, %v1583_v8  ;;  %v1697_v14 = vmax.f32 %v1665_v7, 0.0 }
 0x32c   : > { %v1700_v12 = vmax.f32 %v1668_v9, 0.0  ;;  %v2509_v13 = vpop.f32.mrb[20].mxu1 }
 0x32d   : > { %v1698_v15 = vmax.f32 %v1666_v10, 0.0  ;;  %v2557_v16 = vpop.f32.mrb[20].mxu0  ;;  %v1386_v17 = vpop.f32.mrb[21].mxu1 }
 0x32e   : > { %v2264_v18 = vpack.c.bf16 %v1700_v12, %v1699_v11  ;;  %v1604_v19 = vadd.f32 %v2557_v16, %v2509_v13  ;;  %v1595_v20 = vpop.f32.mrb[21].mxu0  ;;  %v2510_v21 = vpop.f32.mrb[22].mxu1 }
 0x32f   : > { %v2259_v22 = vpack.c.bf16 %v1698_v15, %v1697_v14  ;;  %v1596_v23 = vadd.f32 %v1595_v20, %v1386_v17  ;;  %v2558_v24 = vpop.f32.mrb[22].mxu0  ;;  %v1389_v25 = vpop.f32.mrb[23].mxu1 }
 0x330   : > { %2304 = vst [vmem:[%s3626_s6 + $0x48] sm:$0xff] %v2264_v18   ;;  %v1671_v26 = vadd.f32 %v3697_v35, %v1604_v19  ;;  %v1607_v27 = vadd.f32 %v2558_v24, %v2510_v21  ;;  %v1598_v28 = vpop.f32.mrb[23].mxu0 }
 0x331   : > { %2303 = vst [vmem:[%s3626_s6 + $0x40] sm:$0xff] %v2259_v22   ;;  %v1669_v29 = vadd.f32 %v3697_v35, %v1596_v23  ;;  %v1599_v30 = vadd.f32 %v1598_v28, %v1389_v25 }
 0x332   : > { %v1672_v31 = vadd.f32 %v3697_v35, %v1607_v27  ;;  %v1703_v33 = vmax.f32 %v1671_v26, 0.0 }
 0x333   : > { %v1670_v32 = vadd.f32 %v3697_v35, %v1599_v30  ;;  %v1701_v37 = vmax.f32 %v1669_v29, 0.0 }
 0x334   : > { %v1704_v34 = vmax.f32 %v1672_v31, 0.0  ;;  %v2513_v36 = vpop.f32.mrb[24].mxu1 }
 0x335   : > { %v1702_v38 = vmax.f32 %v1670_v32, 0.0  ;;  %v2561_v39 = vpop.f32.mrb[24].mxu0  ;;  %v1402_v40 = vpop.f32.mrb[25].mxu1 }
 0x336   : > { %v2274_v41 = vpack.c.bf16 %v1704_v34, %v1703_v33  ;;  %v1620_v42 = vadd.f32 %v2561_v39, %v2513_v36  ;;  %v1611_v43 = vpop.f32.mrb[25].mxu0  ;;  %v2514_v44 = vpop.f32.mrb[26].mxu1 }
 0x337   : > { %v2269_v45 = vpack.c.bf16 %v1702_v38, %v1701_v37  ;;  %v1612_v46 = vadd.f32 %v1611_v43, %v1402_v40  ;;  %v2562_v47 = vpop.f32.mrb[26].mxu0  ;;  %v1405_v48 = vpop.f32.mrb[27].mxu1 }
 0x338   : > { %2306 = vst [vmem:[%s3626_s6 + $0x58] sm:$0xff] %v2274_v41   ;;  %v1675_v49 = vadd.f32 %v3697_v35, %v1620_v42  ;;  %v1623_v50 = vadd.f32 %v2562_v47, %v2514_v44  ;;  %v1614_v51 = vpop.f32.mrb[27].mxu0 }
 0x339   : > { %2305 = vst [vmem:[%s3626_s6 + $0x50] sm:$0xff] %v2269_v45   ;;  %v1673_v52 = vadd.f32 %v3697_v35, %v1612_v46  ;;  %v1615_v53 = vadd.f32 %v1614_v51, %v1405_v48 }
 0x33a   : > { %v1676_v54 = vadd.f32 %v3697_v35, %v1623_v50  ;;  %v1707_v56 = vmax.f32 %v1675_v49, 0.0 }
 0x33b   : > { %v1674_v55 = vadd.f32 %v3697_v35, %v1615_v53  ;;  %v1705_v59 = vmax.f32 %v1673_v52, 0.0 }
 0x33c   : > { %v1708_v57 = vmax.f32 %v1676_v54, 0.0  ;;  %v2517_v58 = vpop.f32.mrb[28].mxu1 }
 0x33d   : > { %v1706_v60 = vmax.f32 %v1674_v55, 0.0  ;;  %v2565_v61 = vpop.f32.mrb[28].mxu0  ;;  %v1418_v62 = vpop.f32.mrb[29].mxu1 }
 0x33e   : > { %v2284_v63 = vpack.c.bf16 %v1708_v57, %v1707_v56  ;;  %v1636_v0 = vadd.f32 %v2565_v61, %v2517_v58  ;;  %v1627_v1 = vpop.f32.mrb[29].mxu0  ;;  %v2518_v2 = vpop.f32.mrb[30].mxu1 }
 0x33f   : > { %v2279_v3 = vpack.c.bf16 %v1706_v60, %v1705_v59  ;;  %v1628_v4 = vadd.f32 %v1627_v1, %v1418_v62  ;;  %v2566_v5 = vpop.f32.mrb[30].mxu0  ;;  %v1421_v6 = vpop.f32.mrb[31].mxu1 }
 0x340   : > { %2308 = vst [vmem:[%s3626_s6 + $0x68] sm:$0xff] %v2284_v63   ;;  %v1679_v7 = vadd.f32 %v3697_v35, %v1636_v0  ;;  %v1639_v8 = vadd.f32 %v2566_v5, %v2518_v2  ;;  %v1630_v9 = vpop.f32.mrb[31].mxu0 }
 0x341   : > { %2307 = vst [vmem:[%s3626_s6 + $0x60] sm:$0xff] %v2279_v3   ;;  %v1677_v10 = vadd.f32 %v3697_v35, %v1628_v4  ;;  %v1631_v11 = vadd.f32 %v1630_v9, %v1421_v6 }
 0x342   : > { %v1680_v12 = vadd.f32 %v3697_v35, %v1639_v8  ;;  %v1711_v14 = vmax.f32 %v1679_v7, 0.0 }
 0x343   : > { %v1678_v13 = vadd.f32 %v3697_v35, %v1631_v11  ;;  %v1709_v16 = vmax.f32 %v1677_v10, 0.0 }
 0x344   : > { %v1712_v15 = vmax.f32 %v1680_v12, 0.0 }
 0x345   : > { %v1710_v17 = vmax.f32 %v1678_v13, 0.0 }
 0x346   : > { %v2294_v18 = vpack.c.bf16 %v1712_v15, %v1711_v14 }
 0x347   : > { %v2289_v19 = vpack.c.bf16 %v1710_v17, %v1709_v16 }
 0x348   : > { %2310 = vst [vmem:[%s3626_s6 + $0x78] sm:$0xff] %v2294_v18  }
 0x349   : > { %2309 = vst [vmem:[%s3626_s6 + $0x70] sm:$0xff] %v2289_v19  }
 0x34a PF: > { %s3912_s24 = sld [smem:[#allocation21_spill]]  ;;  %s3913_s18 = sld [smem:[#allocation30_spill]] }
 0x34b   : > { %s1887_s12 = sshll.u32 %s3626_s6, 4  ;;  %s3758_s16 = scalar_lea.sflag [#allocation5], %s344_s13  ;;  %s3754_s12 = int_to_ptr.vmem [resolvable:$true] %s1887_s12 }
 0x34c   : > { %s3022_s5 = scalar_lea.vmem %s3754_s12, 2048  ;;  %p3914_p8 = scmp.ne.s32.totalorder %s3898_s1, 0 }
 0x34d   : > { %p3023_p13 = scmp.ne.s32.totalorder %s3754_s12, %s3022_s5  ;;  %s3193_s25 = smov [#allocation12]  }
 0x34e   : > { %s3026_s26 = sshll.u32 %s3193_s25, 4  ;;  %s3027_s26 = int_to_ptr.vmem [resolvable:$false] %s3026_s26 }
 0x34f   : > { %p3024_p11 = pnand %p3023_p13, %p3914_p8  ;;  %s3028_s11 = scalar_lea.vmem %s3027_s26, 4096 }
 0x350   : > { %s2215_s20 = sshll.u32 %s3912_s24, 11  ;;  %p3029_p9 = scmp.lt.s32.totalorder %s3754_s12, %s3027_s26 }
 0x351   : > { %s3751_s17 = scalar_lea.hbm %s3913_s18, %s2215_s20  ;;  %p3025_p3 = pneg %p3024_p11 }
 0x352   : > { %p3030_p1 = scmp.lt.s32.totalorder %s3028_s11, %s3022_s5 }
 0x354   : > { %p3031_p6 = por %p3030_p1, %p3029_p9 }
 0x356   : > { %p3032_p4 = pnand %p3031_p6, %p3025_p3 }
 0x358   : > { %3035 = shalt.err (!%p3032_p4)
}
 0x359   : > { %s3036_s13 = scalar_lea.hbm %s3751_s17, 2048  ;;  %s3040_s3 = scalar_lea.hbm %s3913_s18, 4096 }
 0x35a   : > { %p3037_p10 = scmp.ne.s32.totalorder %s3751_s17, %s3036_s13  ;;  %p3041_p0 = scmp.lt.u32.totalorder %s3751_s17, %s3913_s18 }
 0x35b   : > { %p3042_p12 = scmp.lt.u32.totalorder %s3040_s3, %s3036_s13  ;;  %p3044_p13 = scmp.lt.u32.totalorder %s3036_s13, %s3751_s17 }
 0x35c   : > { %p3038_p7 = pnand %p3037_p10, %p3914_p8 }
 0x35d   : > { %p3043_p5 = por %p3042_p12, %p3041_p0 }
 0x35e   : > { %p3039_p2 = pneg %p3038_p7 }
 0x35f   : > { %p3045_p11 = por %p3044_p13, %p3043_p5 }
 0x361   : > { %p3046_p3 = pnand %p3045_p11, %p3039_p2 }
 0x363   : > { %3049 = shalt.err (!%p3046_p3)
}
 0x364   : > { %s3194_s20 = smov 64   ;;  %s3195_s27 = smov 4  }
 0x365   : > { %2629 = dma.vmem_to_hbm [thread:$0]  (%p3914_p8), %s3754_s12, 2048, %s3751_s17, %s3758_s16, %s3194_s20, %s3194_s20, %s3195_s27  }
 0x366 PF: > { %p2657_p9 = scmp.ge.s32.totalorder %s3180_s10, 2  ;;  %s1902_s7 = sand.u32 1, %s3128_s21  }
 0x367   : > { %p3915_p1 = scmp.ne.s32.totalorder %s3899_s19, 0  ;;  %s1903_s5 = scalar_lea.sflag [#allocation5], %s1902_s7 }
 0x369   : > { %p2649_p6 = pnand %p2657_p9, %p3915_p1 }
 0x36b   : > { %3123 = dma.done.wait (!%p2649_p6), %s1903_s5, 2048  }
 0x36c   : > { %3125 = vsyncadd (!%p2649_p6), %s1903_s5, 4294965248  ;;  %s26_s10 = sadd.s32 1, %s3180_s10   ;;  %s3917_s24 = sld [smem:[#allocation18_spill]] }
 0x36d   : > { %p3787_p4 = scmp.ge.s32.totalorder %s26_s10, 6   ;;  %s3918_s1 = sld [smem:[#allocation19_spill]] }
 0x36e   : > { %s3919_s26 = sld [smem:[#allocation24_spill]]  ;;  %s3920_s19 = sld [smem:[#allocation22_spill]] }
 0x36f   : > { %s3921_s17 = sld [smem:[#allocation23_spill]]  ;;  %s3923_s21 = smov %s3132_s22 }
 0x370   : > { %s3924_s22 = smov %s3136_s23  ;;  %s3925_s23 = smov %s3528_s15 }
 0x371   : > { %s3927_s27 = smov %s3156_s28  ;;  %s3928_s28 = smov %s3160_s29 }
 0x372   : > { %s3929_s29 = smov %s3465_s14  ;;  %s3930_s30 = smov %s3172_s8 }
 0x373   : > { %s3926_s25 = smov %s3918_s1  ;;  %s3931_s7 = smov %s3176_s9 }
 0x374   : > { %s3932_s8 = smov %s3920_s19  ;;  %25 = sbr.rel (!%p3787_p4) target bundleno = 19 (0x13), region = 129 }
 0x375   : > { %s3933_s9 = smov %s3921_s17 }
 0x37b   :  { %1908 = vsyncpa [#allocation4], 1 }
 0x37c   :  { %1910 = vsyncpa [#allocation4 + $0x1], 1 }
 0x37d   :  { %1911 = vsyncpa [#allocation7], 1 }
 0x37e   :  { %1913 = vsyncpa [#allocation7 + $0x1], 1 }
 0x37f   :  { %1914 = vsyncpa [#allocation10], 1 }
 0x380   :  { %1915 = vsyncpa [#allocation5], 1 }
 0x381   :  { %1917 = vsyncpa [#allocation5 + $0x1], 1 }

</bundles_post_ra>
